<compile_context>
chip_gen: v5e
topology: v5e:2x2
jax: 0.10.0
libtpu: 0.0.40
codegen_flags: <defaults>
</compile_context>

<pallas_src>
import functools

import jax
import jax.numpy as jnp
from jax.experimental import pallas as pl
from jax.experimental.pallas import tpu as pltpu

LANES = 128  # f32 lane width; output lanes are padded to a multiple of this.


# ----------------------------------------------------------------------------
# Pallas kernel
# ----------------------------------------------------------------------------
def _encoder_kernel(Tsteps, Bp, num_layers, hid, x_ref, wemb_ref, bemb_ref,
                    wih0_ref, whh0_ref, b0_ref, *rest):
    """rest = [wf_1, bf_1, ..., wf_{L-1}, bf_{L-1}, wtr, btr, out_ref].

    Packed gate layout (GP = 4*hid lanes; one full 128-lane tile for hid=32):
        [ 0 : 2h)  r,z pre-activations, input+hidden contributions summed,
                   both biases folded in
        [2h : 3h)  i_n + b_in
        [3h : 4h)  h_n + b_hn
    """
    n_fused = 2 * (num_layers - 1)
    fused_refs = rest[:n_fused]
    wtr_ref, btr_ref, out_ref = rest[n_fused], rest[n_fused + 1], rest[-1]

    GP = 4 * hid

    # --- embedding + ReLU on the VPU (a K=2 MXU contraction would be ~98% pad)
    x = x_ref[...]                                   # (Tsteps*Bp, 2), time-major
    wemb = wemb_ref[...]                             # (2, emb)
    x_emb = (x[:, 0:1] * wemb[0:1, :]
             + x[:, 1:2] * wemb[1:2, :]
             + bemb_ref[...])                        # (Tsteps*Bp, emb)
    x_emb = jnp.maximum(x_emb, 0.0)

    # --- layer-0 input gates hoisted out of the recurrence: ONE tall 2-D matmul
    a0_all = jnp.dot(x_emb, wih0_ref[...],
                     preferred_element_type=jnp.float32) + b0_ref[...]
    # (Tsteps*Bp, GP); per-step slices below are static, sublane-aligned windows.

    # --- load weights / pre-broadcast biases ONCE (the time loop is unrolled) --
    whh0 = whh0_ref[...]                             # (hid, GP)
    wfs = [fused_refs[2 * i][...] for i in range(num_layers - 1)]        # (2h, GP)
    bfs = [jnp.broadcast_to(fused_refs[2 * i + 1][...], (Bp, GP))
           for i in range(num_layers - 1)]

    h = [jnp.zeros((Bp, hid), jnp.float32) for _ in range(num_layers)]

    def cell(g, h_prev):
        rz = jax.nn.sigmoid(g[:, :2 * hid])          # one wide sigmoid for r and z
        r, z = rz[:, :hid], rz[:, hid:2 * hid]
        n = jnp.tanh(g[:, 2 * hid:3 * hid] + r * g[:, 3 * hid:4 * hid])
        return (1.0 - z) * n + z * h_prev

    # Static (unrolled) time loop: steps are sequentially dependent through h.
    for t in range(Tsteps):
        # layer 0: only the h-dependent matmul sits on the serial path.
        g0 = a0_all[t * Bp:(t + 1) * Bp, :] + jnp.dot(
            h[0], whh0, preferred_element_type=jnp.float32)
        h[0] = cell(g0, h[0])
        for l in range(1, num_layers):
            cat = jnp.concatenate([h[l - 1], h[l]], axis=1)      # (Bp, 2*hid)
            g = jnp.dot(cat, wfs[l - 1],
                        preferred_element_type=jnp.float32) + bfs[l - 1]
            h[l] = cell(g, h[l])

    alpha = h[num_layers - 1]                        # top-layer output, final step

    # --- transform_layer; output lanes are zero-padded to a full 128-lane tile
    #     so this is a single unmasked full-vreg store (wrapper slices to enc).
    out = jnp.dot(alpha, wtr_ref[...], preferred_element_type=jnp.float32) + btr_ref[...]
    out_ref[...] = out.astype(out_ref.dtype)         # (Bp, enc_padded)


# ----------------------------------------------------------------------------
# Weight repacking into the fused 4*hid-lane gate layout (see kernel docstring)
# ----------------------------------------------------------------------------
def _pack_params(params, *, num_layers, hid, enc):
    def pack_bias(bih, bhh):
        return jnp.concatenate(
            [bih[:, :2 * hid] + bhh[:, :2 * hid],    # r,z biases folded together
             bih[:, 2 * hid:3 * hid],                # b_in
             bhh[:, 2 * hid:3 * hid]], axis=1)       # b_hn

    packed = {}
    # Layer 0: input-path weights (hoisted matmul) and recurrent weights split.
    wih0, whh0 = params["wih0"], params["whh0"]
    in0 = wih0.shape[0]
    packed["wih0"] = jnp.concatenate(
        [wih0[:, :3 * hid], jnp.zeros((in0, hid), jnp.float32)], axis=1)
    packed["whh0"] = jnp.concatenate(
        [whh0[:, :2 * hid], jnp.zeros((hid, hid), jnp.float32),
         whh0[:, 2 * hid:3 * hid]], axis=1)
    packed["b0"] = pack_bias(params["bih0"], params["bhh0"])

    # Layers >= 1: block-diagonal [input ; hidden] -> packed gates, 1 matmul/cell.
    for l in range(1, num_layers):
        wih, whh = params[f"wih{l}"], params[f"whh{l}"]
        in_l = wih.shape[0]
        top = jnp.concatenate(
            [wih[:, :3 * hid], jnp.zeros((in_l, hid), jnp.float32)], axis=1)
        bot = jnp.concatenate(
            [whh[:, :2 * hid], jnp.zeros((hid, hid), jnp.float32),
             whh[:, 2 * hid:3 * hid]], axis=1)
        packed[f"wf{l}"] = jnp.concatenate([top, bot], axis=0)   # (in_l+hid, 4*hid)
        packed[f"bf{l}"] = pack_bias(params[f"bih{l}"], params[f"bhh{l}"])

    # transform_layer: pad output lanes to a multiple of 128 for an unmasked store.
    enc_p = ((enc + LANES - 1) // LANES) * LANES
    wtr, btr = params["wtr"], params["btr"]
    packed["wtr"] = jnp.concatenate(
        [wtr, jnp.zeros((wtr.shape[0], enc_p - enc), jnp.float32)], axis=1)
    packed["btr"] = jnp.concatenate(
        [btr, jnp.zeros((1, enc_p - enc), jnp.float32)], axis=1)
    return packed, enc_p


# ----------------------------------------------------------------------------
# Wrapper
# ----------------------------------------------------------------------------
def encoder_forward(params, x_true, *, Tpred, num_layers, hid, enc):
    B = x_true.shape[0]
    Bp = ((B + 7) // 8) * 8                # pad batch to a full f32 sublane group

    # Effective timesteps of the PyTorch forward (see note at top of file).
    if Tpred >= 3:
        x_sel = x_true[:, 1:Tpred - 1, :]
    else:
        x_sel = x_true[:, 0:1, :]
    # Time-major, batch-padded, flattened layout so every per-step slice inside
    # the kernel is a static sublane-aligned row window.  Wrapper-side plumbing.
    x_sel = jnp.transpose(x_sel, (1, 0, 2)).astype(jnp.float32)   # (Tsteps, B, 2)
    Tsteps = int(x_sel.shape[0])
    if Bp != B:
        x_sel = jnp.pad(x_sel, ((0, 0), (0, Bp - B), (0, 0)))
    x_flat = x_sel.reshape(Tsteps * Bp, 2)                        # (Tsteps*Bp, 2)

    packed, enc_p = _pack_params(params, num_layers=num_layers, hid=hid, enc=enc)
    inputs = [x_flat, params["wemb"], params["bemb"],
              packed["wih0"], packed["whh0"], packed["b0"]]
    for l in range(1, num_layers):
        inputs += [packed[f"wf{l}"], packed[f"bf{l}"]]
    inputs += [packed["wtr"], packed["btr"]]

    kernel = functools.partial(_encoder_kernel, Tsteps, Bp, num_layers, hid)
    # Whole problem (a few tens of KiB) is VMEM-resident -> grid-less call.
    # For large batches, tile Bp with a ("parallel",) grid axis so v7x's two
    # TensorCores both get work; at Bp=8 a grid would only add overhead.
    out = pl.pallas_call(
        kernel,
        out_shape=jax.ShapeDtypeStruct((Bp, enc_p), jnp.float32),
        in_specs=[pl.BlockSpec(memory_space=pltpu.MemorySpace.VMEM)] * len(inputs),
        out_specs=pl.BlockSpec(memory_space=pltpu.MemorySpace.VMEM),
    )(*inputs)
    return out[:B, None, :enc]             # (B, 1, enc), matching PyTorch


# ----------------------------------------------------------------------------
# Pure-JAX reference (mirrors the PyTorch forward exactly) for a sanity check.
# ----------------------------------------------------------------------------
def encoder_ref(params, x_true, *, Tpred, num_layers, hid):
    x_emb = jnp.maximum(
        jnp.einsum("btf,fe->bte", x_true, params["wemb"]) + params["bemb"], 0.0)
    B = x_true.shape[0]
    t_indices = list(range(1, Tpred - 1)) if Tpred >= 3 else [0]
    h = [jnp.zeros((B, hid), jnp.float32) for _ in range(num_layers)]
    alpha = jnp.zeros((B, hid), jnp.float32)
    for t in t_indices:
        inp = x_emb[:, t, :]
        for l in range(num_layers):
            gi = inp @ params[f"wih{l}"] + params[f"bih{l}"]
            gh = h[l] @ params[f"whh{l}"] + params[f"bhh{l}"]
            i_r, i_z, i_n = gi[:, :hid], gi[:, hid:2 * hid], gi[:, 2 * hid:]
            h_r, h_z, h_n = gh[:, :hid], gh[:, hid:2 * hid], gh[:, 2 * hid:]
            r = jax.nn.sigmoid(i_r + h_r)
            z = jax.nn.sigmoid(i_z + h_z)
            n = jnp.tanh(i_n + r * h_n)
            h[l] = (1.0 - z) * n + z * h[l]
            inp = h[l]
        alpha = h[num_layers - 1]
    return (alpha @ params["wtr"] + params["btr"])[:, None, :]


# ----------------------------------------------------------------------------
# Deterministic parameter init (shapes from Encoder.__init__)
# ----------------------------------------------------------------------------
def init_params(key, *, emb, hid, enc, num_layers):
    def u(key, shape, fan_in):
        bound = 1.0 / jnp.sqrt(jnp.float32(fan_in))
        return jax.random.uniform(key, shape, jnp.float32, -bound, bound)

    keys = iter(jax.random.split(key, 4 + 4 * num_layers + 4))
    p = {
        "wemb": u(next(keys), (2, emb), 2),          # embed_layer: Linear(2, emb)
        "bemb": u(next(keys), (1, emb), 2),
        "wtr":  u(next(keys), (hid, enc), hid),      # transform_layer: Linear(hid, enc)
        "btr":  u(next(keys), (1, enc), hid),
    }
    for l in range(num_layers):
        in_l = emb if l == 0 else hid
        p[f"wih{l}"] = u(next(keys), (in_l, 3 * hid), hid)   # gate order [r, z, n]
        p[f"whh{l}"] = u(next(keys), (hid, 3 * hid), hid)
        p[f"bih{l}"] = u(next(keys), (1, 3 * hid), hid)
        p[f"bhh{l}"] = u(next(keys), (1, 3 * hid), hid)
    return p


if __name__ == "__main__":
    # Small shapes consistent with the module: Tpred=8, emb=16, layer=2, hid=32, enc=8
    B, Tpred, emb, num_layers, hid, enc = 2, 8, 16, 2, 32, 8

    key = jax.random.PRNGKey(0)
    k_params, k_x = jax.random.split(key)
    params = init_params(k_params, emb=emb, hid=hid, enc=enc, num_layers=num_layers)
    x_true = jax.random.normal(k_x, (B, Tpred, 2), jnp.float32)

    out = encoder_forward(params, x_true, Tpred=Tpred, num_layers=num_layers,
                          hid=hid, enc=enc)
    out = jax.block_until_ready(out)

    ref = encoder_ref(params, x_true, Tpred=Tpred, num_layers=num_layers, hid=hid)
    assert out.shape == (B, 1, enc), out.shape
    assert jnp.allclose(out, ref, atol=1e-5, rtol=1e-5), "mismatch vs JAX reference"

    print("KERNEL_OK")
</pallas_src>

<mosaic_0001>
module attributes {stable_mosaic.version = 11 : i64} {
  func.func @_encoder_kernel(%arg0: memref<48x2xf32, #tpu.memory_space<vmem>>, %arg1: memref<2x16xf32, #tpu.memory_space<vmem>>, %arg2: memref<1x16xf32, #tpu.memory_space<vmem>>, %arg3: memref<16x128xf32, #tpu.memory_space<vmem>>, %arg4: memref<32x128xf32, #tpu.memory_space<vmem>>, %arg5: memref<1x128xf32, #tpu.memory_space<vmem>>, %arg6: memref<64x128xf32, #tpu.memory_space<vmem>>, %arg7: memref<1x128xf32, #tpu.memory_space<vmem>>, %arg8: memref<32x128xf32, #tpu.memory_space<vmem>>, %arg9: memref<1x128xf32, #tpu.memory_space<vmem>>, %arg10: memref<8x128xf32, #tpu.memory_space<vmem>>) attributes {dimension_semantics = [], scalar_prefetch = 0 : i64, scratch_operands = 0 : i64, tpu.core_type = #tpu.core_type<tc>} {
    %c0 = arith.constant 0 : index
    %c0_0 = arith.constant 0 : index
    %0 = vector.load %arg0[%c0, %c0_0] : memref<48x2xf32, #tpu.memory_space<vmem>>, vector<48x2xf32>
    %c0_1 = arith.constant 0 : index
    %c0_2 = arith.constant 0 : index
    %1 = vector.load %arg1[%c0_1, %c0_2] : memref<2x16xf32, #tpu.memory_space<vmem>>, vector<2x16xf32>
    %2 = vector.extract_strided_slice %0 {offsets = [0, 0], sizes = [48, 1], strides = [1, 1]} : vector<48x2xf32> to vector<48x1xf32>
    %3 = vector.extract_strided_slice %1 {offsets = [0, 0], sizes = [1, 16], strides = [1, 1]} : vector<2x16xf32> to vector<1x16xf32>
    %4 = vector.broadcast %2 : vector<48x1xf32> to vector<48x16xf32>
    %5 = vector.broadcast %3 : vector<1x16xf32> to vector<48x16xf32>
    %6 = arith.mulf %4, %5 : vector<48x16xf32>
    %7 = vector.extract_strided_slice %0 {offsets = [0, 1], sizes = [48, 1], strides = [1, 1]} : vector<48x2xf32> to vector<48x1xf32>
    %8 = vector.extract_strided_slice %1 {offsets = [1, 0], sizes = [1, 16], strides = [1, 1]} : vector<2x16xf32> to vector<1x16xf32>
    %9 = vector.broadcast %7 : vector<48x1xf32> to vector<48x16xf32>
    %10 = vector.broadcast %8 : vector<1x16xf32> to vector<48x16xf32>
    %11 = arith.mulf %9, %10 : vector<48x16xf32>
    %12 = arith.addf %6, %11 : vector<48x16xf32>
    %c0_3 = arith.constant 0 : index
    %c0_4 = arith.constant 0 : index
    %13 = vector.load %arg2[%c0_3, %c0_4] : memref<1x16xf32, #tpu.memory_space<vmem>>, vector<1x16xf32>
    %14 = vector.broadcast %13 : vector<1x16xf32> to vector<48x16xf32>
    %15 = arith.addf %12, %14 : vector<48x16xf32>
    %cst = arith.constant 0.000000e+00 : f32
    %16 = vector.broadcast %cst : f32 to vector<48x16xf32>
    %17 = arith.maximumf %15, %16 : vector<48x16xf32>
    %c0_5 = arith.constant 0 : index
    %c0_6 = arith.constant 0 : index
    %18 = vector.load %arg3[%c0_5, %c0_6] : memref<16x128xf32, #tpu.memory_space<vmem>>, vector<16x128xf32>
    %cst_7 = arith.constant dense<0.000000e+00> : vector<48x128xf32>
    %19 = tpu.matmul %17, %18, %cst_7 {dimension_numbers = #tpu.dot_dimension_numbers<[1], [0], [0], [1], [0, 0, 1, 1], [], []>} : vector<48x16xf32>, vector<16x128xf32>, vector<48x128xf32> -> vector<48x128xf32>
    %c0_8 = arith.constant 0 : index
    %c0_9 = arith.constant 0 : index
    %20 = vector.load %arg5[%c0_8, %c0_9] : memref<1x128xf32, #tpu.memory_space<vmem>>, vector<1x128xf32>
    %21 = vector.broadcast %20 : vector<1x128xf32> to vector<48x128xf32>
    %22 = arith.addf %19, %21 : vector<48x128xf32>
    %c0_10 = arith.constant 0 : index
    %c0_11 = arith.constant 0 : index
    %23 = vector.load %arg4[%c0_10, %c0_11] : memref<32x128xf32, #tpu.memory_space<vmem>>, vector<32x128xf32>
    %c0_12 = arith.constant 0 : index
    %c0_13 = arith.constant 0 : index
    %24 = vector.load %arg6[%c0_12, %c0_13] : memref<64x128xf32, #tpu.memory_space<vmem>>, vector<64x128xf32>
    %c0_14 = arith.constant 0 : index
    %c0_15 = arith.constant 0 : index
    %25 = vector.load %arg7[%c0_14, %c0_15] : memref<1x128xf32, #tpu.memory_space<vmem>>, vector<1x128xf32>
    %26 = vector.shape_cast %25 : vector<1x128xf32> to vector<1x128xf32>
    %27 = vector.broadcast %26 : vector<1x128xf32> to vector<8x128xf32>
    %cst_16 = arith.constant 0.000000e+00 : f32
    %28 = vector.broadcast %cst_16 : f32 to vector<8x32xf32>
    %cst_17 = arith.constant 0.000000e+00 : f32
    %29 = vector.broadcast %cst_17 : f32 to vector<8x32xf32>
    %30 = vector.extract_strided_slice %22 {offsets = [0, 0], sizes = [8, 128], strides = [1, 1]} : vector<48x128xf32> to vector<8x128xf32>
    %cst_18 = arith.constant dense<0.000000e+00> : vector<8x128xf32>
    %31 = tpu.matmul %28, %23, %cst_18 {dimension_numbers = #tpu.dot_dimension_numbers<[1], [0], [0], [1], [0, 0, 1, 1], [], []>} : vector<8x32xf32>, vector<32x128xf32>, vector<8x128xf32> -> vector<8x128xf32>
    %32 = arith.addf %30, %31 : vector<8x128xf32>
    %33 = vector.extract_strided_slice %32 {offsets = [0, 0], sizes = [8, 64], strides = [1, 1]} : vector<8x128xf32> to vector<8x64xf32>
    %34 = arith.negf %33 : vector<8x64xf32>
    %35 = math.exp %34 : vector<8x64xf32>
    %cst_19 = arith.constant 1.000000e+00 : f32
    %36 = vector.broadcast %cst_19 : f32 to vector<8x64xf32>
    %37 = arith.addf %36, %35 : vector<8x64xf32>
    %38 = arith.divf %36, %37 : vector<8x64xf32>
    %39 = vector.extract_strided_slice %38 {offsets = [0, 0], sizes = [8, 32], strides = [1, 1]} : vector<8x64xf32> to vector<8x32xf32>
    %40 = vector.extract_strided_slice %38 {offsets = [0, 32], sizes = [8, 32], strides = [1, 1]} : vector<8x64xf32> to vector<8x32xf32>
    %41 = vector.extract_strided_slice %32 {offsets = [0, 64], sizes = [8, 32], strides = [1, 1]} : vector<8x128xf32> to vector<8x32xf32>
    %42 = vector.extract_strided_slice %32 {offsets = [0, 96], sizes = [8, 32], strides = [1, 1]} : vector<8x128xf32> to vector<8x32xf32>
    %43 = arith.mulf %39, %42 : vector<8x32xf32>
    %44 = arith.addf %41, %43 : vector<8x32xf32>
    %45 = math.tanh %44 : vector<8x32xf32>
    %cst_20 = arith.constant 1.000000e+00 : f32
    %46 = vector.broadcast %cst_20 : f32 to vector<8x32xf32>
    %47 = arith.subf %46, %40 : vector<8x32xf32>
    %48 = arith.mulf %47, %45 : vector<8x32xf32>
    %49 = arith.mulf %40, %28 : vector<8x32xf32>
    %50 = arith.addf %48, %49 : vector<8x32xf32>
    %51 = tpu.concatenate %50, %29 in 1 : vector<8x32xf32>, vector<8x32xf32> -> vector<8x64xf32>
    %cst_21 = arith.constant dense<0.000000e+00> : vector<8x128xf32>
    %52 = tpu.matmul %51, %24, %cst_21 {dimension_numbers = #tpu.dot_dimension_numbers<[1], [0], [0], [1], [0, 0, 1, 1], [], []>} : vector<8x64xf32>, vector<64x128xf32>, vector<8x128xf32> -> vector<8x128xf32>
    %53 = arith.addf %52, %27 : vector<8x128xf32>
    %54 = vector.extract_strided_slice %53 {offsets = [0, 0], sizes = [8, 64], strides = [1, 1]} : vector<8x128xf32> to vector<8x64xf32>
    %55 = arith.negf %54 : vector<8x64xf32>
    %56 = math.exp %55 : vector<8x64xf32>
    %cst_22 = arith.constant 1.000000e+00 : f32
    %57 = vector.broadcast %cst_22 : f32 to vector<8x64xf32>
    %58 = arith.addf %57, %56 : vector<8x64xf32>
    %59 = arith.divf %57, %58 : vector<8x64xf32>
    %60 = vector.extract_strided_slice %59 {offsets = [0, 0], sizes = [8, 32], strides = [1, 1]} : vector<8x64xf32> to vector<8x32xf32>
    %61 = vector.extract_strided_slice %59 {offsets = [0, 32], sizes = [8, 32], strides = [1, 1]} : vector<8x64xf32> to vector<8x32xf32>
    %62 = vector.extract_strided_slice %53 {offsets = [0, 64], sizes = [8, 32], strides = [1, 1]} : vector<8x128xf32> to vector<8x32xf32>
    %63 = vector.extract_strided_slice %53 {offsets = [0, 96], sizes = [8, 32], strides = [1, 1]} : vector<8x128xf32> to vector<8x32xf32>
    %64 = arith.mulf %60, %63 : vector<8x32xf32>
    %65 = arith.addf %62, %64 : vector<8x32xf32>
    %66 = math.tanh %65 : vector<8x32xf32>
    %cst_23 = arith.constant 1.000000e+00 : f32
    %67 = vector.broadcast %cst_23 : f32 to vector<8x32xf32>
    %68 = arith.subf %67, %61 : vector<8x32xf32>
    %69 = arith.mulf %68, %66 : vector<8x32xf32>
    %70 = arith.mulf %61, %29 : vector<8x32xf32>
    %71 = arith.addf %69, %70 : vector<8x32xf32>
    %72 = vector.extract_strided_slice %22 {offsets = [8, 0], sizes = [8, 128], strides = [1, 1]} : vector<48x128xf32> to vector<8x128xf32>
    %cst_24 = arith.constant dense<0.000000e+00> : vector<8x128xf32>
    %73 = tpu.matmul %50, %23, %cst_24 {dimension_numbers = #tpu.dot_dimension_numbers<[1], [0], [0], [1], [0, 0, 1, 1], [], []>} : vector<8x32xf32>, vector<32x128xf32>, vector<8x128xf32> -> vector<8x128xf32>
    %74 = arith.addf %72, %73 : vector<8x128xf32>
    %75 = vector.extract_strided_slice %74 {offsets = [0, 0], sizes = [8, 64], strides = [1, 1]} : vector<8x128xf32> to vector<8x64xf32>
    %76 = arith.negf %75 : vector<8x64xf32>
    %77 = math.exp %76 : vector<8x64xf32>
    %cst_25 = arith.constant 1.000000e+00 : f32
    %78 = vector.broadcast %cst_25 : f32 to vector<8x64xf32>
    %79 = arith.addf %78, %77 : vector<8x64xf32>
    %80 = arith.divf %78, %79 : vector<8x64xf32>
    %81 = vector.extract_strided_slice %80 {offsets = [0, 0], sizes = [8, 32], strides = [1, 1]} : vector<8x64xf32> to vector<8x32xf32>
    %82 = vector.extract_strided_slice %80 {offsets = [0, 32], sizes = [8, 32], strides = [1, 1]} : vector<8x64xf32> to vector<8x32xf32>
    %83 = vector.extract_strided_slice %74 {offsets = [0, 64], sizes = [8, 32], strides = [1, 1]} : vector<8x128xf32> to vector<8x32xf32>
    %84 = vector.extract_strided_slice %74 {offsets = [0, 96], sizes = [8, 32], strides = [1, 1]} : vector<8x128xf32> to vector<8x32xf32>
    %85 = arith.mulf %81, %84 : vector<8x32xf32>
    %86 = arith.addf %83, %85 : vector<8x32xf32>
    %87 = math.tanh %86 : vector<8x32xf32>
    %cst_26 = arith.constant 1.000000e+00 : f32
    %88 = vector.broadcast %cst_26 : f32 to vector<8x32xf32>
    %89 = arith.subf %88, %82 : vector<8x32xf32>
    %90 = arith.mulf %89, %87 : vector<8x32xf32>
    %91 = arith.mulf %82, %50 : vector<8x32xf32>
    %92 = arith.addf %90, %91 : vector<8x32xf32>
    %93 = tpu.concatenate %92, %71 in 1 : vector<8x32xf32>, vector<8x32xf32> -> vector<8x64xf32>
    %cst_27 = arith.constant dense<0.000000e+00> : vector<8x128xf32>
    %94 = tpu.matmul %93, %24, %cst_27 {dimension_numbers = #tpu.dot_dimension_numbers<[1], [0], [0], [1], [0, 0, 1, 1], [], []>} : vector<8x64xf32>, vector<64x128xf32>, vector<8x128xf32> -> vector<8x128xf32>
    %95 = arith.addf %94, %27 : vector<8x128xf32>
    %96 = vector.extract_strided_slice %95 {offsets = [0, 0], sizes = [8, 64], strides = [1, 1]} : vector<8x128xf32> to vector<8x64xf32>
    %97 = arith.negf %96 : vector<8x64xf32>
    %98 = math.exp %97 : vector<8x64xf32>
    %cst_28 = arith.constant 1.000000e+00 : f32
    %99 = vector.broadcast %cst_28 : f32 to vector<8x64xf32>
    %100 = arith.addf %99, %98 : vector<8x64xf32>
    %101 = arith.divf %99, %100 : vector<8x64xf32>
    %102 = vector.extract_strided_slice %101 {offsets = [0, 0], sizes = [8, 32], strides = [1, 1]} : vector<8x64xf32> to vector<8x32xf32>
    %103 = vector.extract_strided_slice %101 {offsets = [0, 32], sizes = [8, 32], strides = [1, 1]} : vector<8x64xf32> to vector<8x32xf32>
    %104 = vector.extract_strided_slice %95 {offsets = [0, 64], sizes = [8, 32], strides = [1, 1]} : vector<8x128xf32> to vector<8x32xf32>
    %105 = vector.extract_strided_slice %95 {offsets = [0, 96], sizes = [8, 32], strides = [1, 1]} : vector<8x128xf32> to vector<8x32xf32>
    %106 = arith.mulf %102, %105 : vector<8x32xf32>
    %107 = arith.addf %104, %106 : vector<8x32xf32>
    %108 = math.tanh %107 : vector<8x32xf32>
    %cst_29 = arith.constant 1.000000e+00 : f32
    %109 = vector.broadcast %cst_29 : f32 to vector<8x32xf32>
    %110 = arith.subf %109, %103 : vector<8x32xf32>
    %111 = arith.mulf %110, %108 : vector<8x32xf32>
    %112 = arith.mulf %103, %71 : vector<8x32xf32>
    %113 = arith.addf %111, %112 : vector<8x32xf32>
    %114 = vector.extract_strided_slice %22 {offsets = [16, 0], sizes = [8, 128], strides = [1, 1]} : vector<48x128xf32> to vector<8x128xf32>
    %cst_30 = arith.constant dense<0.000000e+00> : vector<8x128xf32>
    %115 = tpu.matmul %92, %23, %cst_30 {dimension_numbers = #tpu.dot_dimension_numbers<[1], [0], [0], [1], [0, 0, 1, 1], [], []>} : vector<8x32xf32>, vector<32x128xf32>, vector<8x128xf32> -> vector<8x128xf32>
    %116 = arith.addf %114, %115 : vector<8x128xf32>
    %117 = vector.extract_strided_slice %116 {offsets = [0, 0], sizes = [8, 64], strides = [1, 1]} : vector<8x128xf32> to vector<8x64xf32>
    %118 = arith.negf %117 : vector<8x64xf32>
    %119 = math.exp %118 : vector<8x64xf32>
    %cst_31 = arith.constant 1.000000e+00 : f32
    %120 = vector.broadcast %cst_31 : f32 to vector<8x64xf32>
    %121 = arith.addf %120, %119 : vector<8x64xf32>
    %122 = arith.divf %120, %121 : vector<8x64xf32>
    %123 = vector.extract_strided_slice %122 {offsets = [0, 0], sizes = [8, 32], strides = [1, 1]} : vector<8x64xf32> to vector<8x32xf32>
    %124 = vector.extract_strided_slice %122 {offsets = [0, 32], sizes = [8, 32], strides = [1, 1]} : vector<8x64xf32> to vector<8x32xf32>
    %125 = vector.extract_strided_slice %116 {offsets = [0, 64], sizes = [8, 32], strides = [1, 1]} : vector<8x128xf32> to vector<8x32xf32>
    %126 = vector.extract_strided_slice %116 {offsets = [0, 96], sizes = [8, 32], strides = [1, 1]} : vector<8x128xf32> to vector<8x32xf32>
    %127 = arith.mulf %123, %126 : vector<8x32xf32>
    %128 = arith.addf %125, %127 : vector<8x32xf32>
    %129 = math.tanh %128 : vector<8x32xf32>
    %cst_32 = arith.constant 1.000000e+00 : f32
    %130 = vector.broadcast %cst_32 : f32 to vector<8x32xf32>
    %131 = arith.subf %130, %124 : vector<8x32xf32>
    %132 = arith.mulf %131, %129 : vector<8x32xf32>
    %133 = arith.mulf %124, %92 : vector<8x32xf32>
    %134 = arith.addf %132, %133 : vector<8x32xf32>
    %135 = tpu.concatenate %134, %113 in 1 : vector<8x32xf32>, vector<8x32xf32> -> vector<8x64xf32>
    %cst_33 = arith.constant dense<0.000000e+00> : vector<8x128xf32>
    %136 = tpu.matmul %135, %24, %cst_33 {dimension_numbers = #tpu.dot_dimension_numbers<[1], [0], [0], [1], [0, 0, 1, 1], [], []>} : vector<8x64xf32>, vector<64x128xf32>, vector<8x128xf32> -> vector<8x128xf32>
    %137 = arith.addf %136, %27 : vector<8x128xf32>
    %138 = vector.extract_strided_slice %137 {offsets = [0, 0], sizes = [8, 64], strides = [1, 1]} : vector<8x128xf32> to vector<8x64xf32>
    %139 = arith.negf %138 : vector<8x64xf32>
    %140 = math.exp %139 : vector<8x64xf32>
    %cst_34 = arith.constant 1.000000e+00 : f32
    %141 = vector.broadcast %cst_34 : f32 to vector<8x64xf32>
    %142 = arith.addf %141, %140 : vector<8x64xf32>
    %143 = arith.divf %141, %142 : vector<8x64xf32>
    %144 = vector.extract_strided_slice %143 {offsets = [0, 0], sizes = [8, 32], strides = [1, 1]} : vector<8x64xf32> to vector<8x32xf32>
    %145 = vector.extract_strided_slice %143 {offsets = [0, 32], sizes = [8, 32], strides = [1, 1]} : vector<8x64xf32> to vector<8x32xf32>
    %146 = vector.extract_strided_slice %137 {offsets = [0, 64], sizes = [8, 32], strides = [1, 1]} : vector<8x128xf32> to vector<8x32xf32>
    %147 = vector.extract_strided_slice %137 {offsets = [0, 96], sizes = [8, 32], strides = [1, 1]} : vector<8x128xf32> to vector<8x32xf32>
    %148 = arith.mulf %144, %147 : vector<8x32xf32>
    %149 = arith.addf %146, %148 : vector<8x32xf32>
    %150 = math.tanh %149 : vector<8x32xf32>
    %cst_35 = arith.constant 1.000000e+00 : f32
    %151 = vector.broadcast %cst_35 : f32 to vector<8x32xf32>
    %152 = arith.subf %151, %145 : vector<8x32xf32>
    %153 = arith.mulf %152, %150 : vector<8x32xf32>
    %154 = arith.mulf %145, %113 : vector<8x32xf32>
    %155 = arith.addf %153, %154 : vector<8x32xf32>
    %156 = vector.extract_strided_slice %22 {offsets = [24, 0], sizes = [8, 128], strides = [1, 1]} : vector<48x128xf32> to vector<8x128xf32>
    %cst_36 = arith.constant dense<0.000000e+00> : vector<8x128xf32>
    %157 = tpu.matmul %134, %23, %cst_36 {dimension_numbers = #tpu.dot_dimension_numbers<[1], [0], [0], [1], [0, 0, 1, 1], [], []>} : vector<8x32xf32>, vector<32x128xf32>, vector<8x128xf32> -> vector<8x128xf32>
    %158 = arith.addf %156, %157 : vector<8x128xf32>
    %159 = vector.extract_strided_slice %158 {offsets = [0, 0], sizes = [8, 64], strides = [1, 1]} : vector<8x128xf32> to vector<8x64xf32>
    %160 = arith.negf %159 : vector<8x64xf32>
    %161 = math.exp %160 : vector<8x64xf32>
    %cst_37 = arith.constant 1.000000e+00 : f32
    %162 = vector.broadcast %cst_37 : f32 to vector<8x64xf32>
    %163 = arith.addf %162, %161 : vector<8x64xf32>
    %164 = arith.divf %162, %163 : vector<8x64xf32>
    %165 = vector.extract_strided_slice %164 {offsets = [0, 0], sizes = [8, 32], strides = [1, 1]} : vector<8x64xf32> to vector<8x32xf32>
    %166 = vector.extract_strided_slice %164 {offsets = [0, 32], sizes = [8, 32], strides = [1, 1]} : vector<8x64xf32> to vector<8x32xf32>
    %167 = vector.extract_strided_slice %158 {offsets = [0, 64], sizes = [8, 32], strides = [1, 1]} : vector<8x128xf32> to vector<8x32xf32>
    %168 = vector.extract_strided_slice %158 {offsets = [0, 96], sizes = [8, 32], strides = [1, 1]} : vector<8x128xf32> to vector<8x32xf32>
    %169 = arith.mulf %165, %168 : vector<8x32xf32>
    %170 = arith.addf %167, %169 : vector<8x32xf32>
    %171 = math.tanh %170 : vector<8x32xf32>
    %cst_38 = arith.constant 1.000000e+00 : f32
    %172 = vector.broadcast %cst_38 : f32 to vector<8x32xf32>
    %173 = arith.subf %172, %166 : vector<8x32xf32>
    %174 = arith.mulf %173, %171 : vector<8x32xf32>
    %175 = arith.mulf %166, %134 : vector<8x32xf32>
    %176 = arith.addf %174, %175 : vector<8x32xf32>
    %177 = tpu.concatenate %176, %155 in 1 : vector<8x32xf32>, vector<8x32xf32> -> vector<8x64xf32>
    %cst_39 = arith.constant dense<0.000000e+00> : vector<8x128xf32>
    %178 = tpu.matmul %177, %24, %cst_39 {dimension_numbers = #tpu.dot_dimension_numbers<[1], [0], [0], [1], [0, 0, 1, 1], [], []>} : vector<8x64xf32>, vector<64x128xf32>, vector<8x128xf32> -> vector<8x128xf32>
    %179 = arith.addf %178, %27 : vector<8x128xf32>
    %180 = vector.extract_strided_slice %179 {offsets = [0, 0], sizes = [8, 64], strides = [1, 1]} : vector<8x128xf32> to vector<8x64xf32>
    %181 = arith.negf %180 : vector<8x64xf32>
    %182 = math.exp %181 : vector<8x64xf32>
    %cst_40 = arith.constant 1.000000e+00 : f32
    %183 = vector.broadcast %cst_40 : f32 to vector<8x64xf32>
    %184 = arith.addf %183, %182 : vector<8x64xf32>
    %185 = arith.divf %183, %184 : vector<8x64xf32>
    %186 = vector.extract_strided_slice %185 {offsets = [0, 0], sizes = [8, 32], strides = [1, 1]} : vector<8x64xf32> to vector<8x32xf32>
    %187 = vector.extract_strided_slice %185 {offsets = [0, 32], sizes = [8, 32], strides = [1, 1]} : vector<8x64xf32> to vector<8x32xf32>
    %188 = vector.extract_strided_slice %179 {offsets = [0, 64], sizes = [8, 32], strides = [1, 1]} : vector<8x128xf32> to vector<8x32xf32>
    %189 = vector.extract_strided_slice %179 {offsets = [0, 96], sizes = [8, 32], strides = [1, 1]} : vector<8x128xf32> to vector<8x32xf32>
    %190 = arith.mulf %186, %189 : vector<8x32xf32>
    %191 = arith.addf %188, %190 : vector<8x32xf32>
    %192 = math.tanh %191 : vector<8x32xf32>
    %cst_41 = arith.constant 1.000000e+00 : f32
    %193 = vector.broadcast %cst_41 : f32 to vector<8x32xf32>
    %194 = arith.subf %193, %187 : vector<8x32xf32>
    %195 = arith.mulf %194, %192 : vector<8x32xf32>
    %196 = arith.mulf %187, %155 : vector<8x32xf32>
    %197 = arith.addf %195, %196 : vector<8x32xf32>
    %198 = vector.extract_strided_slice %22 {offsets = [32, 0], sizes = [8, 128], strides = [1, 1]} : vector<48x128xf32> to vector<8x128xf32>
    %cst_42 = arith.constant dense<0.000000e+00> : vector<8x128xf32>
    %199 = tpu.matmul %176, %23, %cst_42 {dimension_numbers = #tpu.dot_dimension_numbers<[1], [0], [0], [1], [0, 0, 1, 1], [], []>} : vector<8x32xf32>, vector<32x128xf32>, vector<8x128xf32> -> vector<8x128xf32>
    %200 = arith.addf %198, %199 : vector<8x128xf32>
    %201 = vector.extract_strided_slice %200 {offsets = [0, 0], sizes = [8, 64], strides = [1, 1]} : vector<8x128xf32> to vector<8x64xf32>
    %202 = arith.negf %201 : vector<8x64xf32>
    %203 = math.exp %202 : vector<8x64xf32>
    %cst_43 = arith.constant 1.000000e+00 : f32
    %204 = vector.broadcast %cst_43 : f32 to vector<8x64xf32>
    %205 = arith.addf %204, %203 : vector<8x64xf32>
    %206 = arith.divf %204, %205 : vector<8x64xf32>
    %207 = vector.extract_strided_slice %206 {offsets = [0, 0], sizes = [8, 32], strides = [1, 1]} : vector<8x64xf32> to vector<8x32xf32>
    %208 = vector.extract_strided_slice %206 {offsets = [0, 32], sizes = [8, 32], strides = [1, 1]} : vector<8x64xf32> to vector<8x32xf32>
    %209 = vector.extract_strided_slice %200 {offsets = [0, 64], sizes = [8, 32], strides = [1, 1]} : vector<8x128xf32> to vector<8x32xf32>
    %210 = vector.extract_strided_slice %200 {offsets = [0, 96], sizes = [8, 32], strides = [1, 1]} : vector<8x128xf32> to vector<8x32xf32>
    %211 = arith.mulf %207, %210 : vector<8x32xf32>
    %212 = arith.addf %209, %211 : vector<8x32xf32>
    %213 = math.tanh %212 : vector<8x32xf32>
    %cst_44 = arith.constant 1.000000e+00 : f32
    %214 = vector.broadcast %cst_44 : f32 to vector<8x32xf32>
    %215 = arith.subf %214, %208 : vector<8x32xf32>
    %216 = arith.mulf %215, %213 : vector<8x32xf32>
    %217 = arith.mulf %208, %176 : vector<8x32xf32>
    %218 = arith.addf %216, %217 : vector<8x32xf32>
    %219 = tpu.concatenate %218, %197 in 1 : vector<8x32xf32>, vector<8x32xf32> -> vector<8x64xf32>
    %cst_45 = arith.constant dense<0.000000e+00> : vector<8x128xf32>
    %220 = tpu.matmul %219, %24, %cst_45 {dimension_numbers = #tpu.dot_dimension_numbers<[1], [0], [0], [1], [0, 0, 1, 1], [], []>} : vector<8x64xf32>, vector<64x128xf32>, vector<8x128xf32> -> vector<8x128xf32>
    %221 = arith.addf %220, %27 : vector<8x128xf32>
    %222 = vector.extract_strided_slice %221 {offsets = [0, 0], sizes = [8, 64], strides = [1, 1]} : vector<8x128xf32> to vector<8x64xf32>
    %223 = arith.negf %222 : vector<8x64xf32>
    %224 = math.exp %223 : vector<8x64xf32>
    %cst_46 = arith.constant 1.000000e+00 : f32
    %225 = vector.broadcast %cst_46 : f32 to vector<8x64xf32>
    %226 = arith.addf %225, %224 : vector<8x64xf32>
    %227 = arith.divf %225, %226 : vector<8x64xf32>
    %228 = vector.extract_strided_slice %227 {offsets = [0, 0], sizes = [8, 32], strides = [1, 1]} : vector<8x64xf32> to vector<8x32xf32>
    %229 = vector.extract_strided_slice %227 {offsets = [0, 32], sizes = [8, 32], strides = [1, 1]} : vector<8x64xf32> to vector<8x32xf32>
    %230 = vector.extract_strided_slice %221 {offsets = [0, 64], sizes = [8, 32], strides = [1, 1]} : vector<8x128xf32> to vector<8x32xf32>
    %231 = vector.extract_strided_slice %221 {offsets = [0, 96], sizes = [8, 32], strides = [1, 1]} : vector<8x128xf32> to vector<8x32xf32>
    %232 = arith.mulf %228, %231 : vector<8x32xf32>
    %233 = arith.addf %230, %232 : vector<8x32xf32>
    %234 = math.tanh %233 : vector<8x32xf32>
    %cst_47 = arith.constant 1.000000e+00 : f32
    %235 = vector.broadcast %cst_47 : f32 to vector<8x32xf32>
    %236 = arith.subf %235, %229 : vector<8x32xf32>
    %237 = arith.mulf %236, %234 : vector<8x32xf32>
    %238 = arith.mulf %229, %197 : vector<8x32xf32>
    %239 = arith.addf %237, %238 : vector<8x32xf32>
    %240 = vector.extract_strided_slice %22 {offsets = [40, 0], sizes = [8, 128], strides = [1, 1]} : vector<48x128xf32> to vector<8x128xf32>
    %cst_48 = arith.constant dense<0.000000e+00> : vector<8x128xf32>
    %241 = tpu.matmul %218, %23, %cst_48 {dimension_numbers = #tpu.dot_dimension_numbers<[1], [0], [0], [1], [0, 0, 1, 1], [], []>} : vector<8x32xf32>, vector<32x128xf32>, vector<8x128xf32> -> vector<8x128xf32>
    %242 = arith.addf %240, %241 : vector<8x128xf32>
    %243 = vector.extract_strided_slice %242 {offsets = [0, 0], sizes = [8, 64], strides = [1, 1]} : vector<8x128xf32> to vector<8x64xf32>
    %244 = arith.negf %243 : vector<8x64xf32>
    %245 = math.exp %244 : vector<8x64xf32>
    %cst_49 = arith.constant 1.000000e+00 : f32
    %246 = vector.broadcast %cst_49 : f32 to vector<8x64xf32>
    %247 = arith.addf %246, %245 : vector<8x64xf32>
    %248 = arith.divf %246, %247 : vector<8x64xf32>
    %249 = vector.extract_strided_slice %248 {offsets = [0, 0], sizes = [8, 32], strides = [1, 1]} : vector<8x64xf32> to vector<8x32xf32>
    %250 = vector.extract_strided_slice %248 {offsets = [0, 32], sizes = [8, 32], strides = [1, 1]} : vector<8x64xf32> to vector<8x32xf32>
    %251 = vector.extract_strided_slice %242 {offsets = [0, 64], sizes = [8, 32], strides = [1, 1]} : vector<8x128xf32> to vector<8x32xf32>
    %252 = vector.extract_strided_slice %242 {offsets = [0, 96], sizes = [8, 32], strides = [1, 1]} : vector<8x128xf32> to vector<8x32xf32>
    %253 = arith.mulf %249, %252 : vector<8x32xf32>
    %254 = arith.addf %251, %253 : vector<8x32xf32>
    %255 = math.tanh %254 : vector<8x32xf32>
    %cst_50 = arith.constant 1.000000e+00 : f32
    %256 = vector.broadcast %cst_50 : f32 to vector<8x32xf32>
    %257 = arith.subf %256, %250 : vector<8x32xf32>
    %258 = arith.mulf %257, %255 : vector<8x32xf32>
    %259 = arith.mulf %250, %218 : vector<8x32xf32>
    %260 = arith.addf %258, %259 : vector<8x32xf32>
    %261 = tpu.concatenate %260, %239 in 1 : vector<8x32xf32>, vector<8x32xf32> -> vector<8x64xf32>
    %cst_51 = arith.constant dense<0.000000e+00> : vector<8x128xf32>
    %262 = tpu.matmul %261, %24, %cst_51 {dimension_numbers = #tpu.dot_dimension_numbers<[1], [0], [0], [1], [0, 0, 1, 1], [], []>} : vector<8x64xf32>, vector<64x128xf32>, vector<8x128xf32> -> vector<8x128xf32>
    %263 = arith.addf %262, %27 : vector<8x128xf32>
    %264 = vector.extract_strided_slice %263 {offsets = [0, 0], sizes = [8, 64], strides = [1, 1]} : vector<8x128xf32> to vector<8x64xf32>
    %265 = arith.negf %264 : vector<8x64xf32>
    %266 = math.exp %265 : vector<8x64xf32>
    %cst_52 = arith.constant 1.000000e+00 : f32
    %267 = vector.broadcast %cst_52 : f32 to vector<8x64xf32>
    %268 = arith.addf %267, %266 : vector<8x64xf32>
    %269 = arith.divf %267, %268 : vector<8x64xf32>
    %270 = vector.extract_strided_slice %269 {offsets = [0, 0], sizes = [8, 32], strides = [1, 1]} : vector<8x64xf32> to vector<8x32xf32>
    %271 = vector.extract_strided_slice %269 {offsets = [0, 32], sizes = [8, 32], strides = [1, 1]} : vector<8x64xf32> to vector<8x32xf32>
    %272 = vector.extract_strided_slice %263 {offsets = [0, 64], sizes = [8, 32], strides = [1, 1]} : vector<8x128xf32> to vector<8x32xf32>
    %273 = vector.extract_strided_slice %263 {offsets = [0, 96], sizes = [8, 32], strides = [1, 1]} : vector<8x128xf32> to vector<8x32xf32>
    %274 = arith.mulf %270, %273 : vector<8x32xf32>
    %275 = arith.addf %272, %274 : vector<8x32xf32>
    %276 = math.tanh %275 : vector<8x32xf32>
    %cst_53 = arith.constant 1.000000e+00 : f32
    %277 = vector.broadcast %cst_53 : f32 to vector<8x32xf32>
    %278 = arith.subf %277, %271 : vector<8x32xf32>
    %279 = arith.mulf %278, %276 : vector<8x32xf32>
    %280 = arith.mulf %271, %239 : vector<8x32xf32>
    %281 = arith.addf %279, %280 : vector<8x32xf32>
    %c0_54 = arith.constant 0 : index
    %c0_55 = arith.constant 0 : index
    %282 = vector.load %arg8[%c0_54, %c0_55] : memref<32x128xf32, #tpu.memory_space<vmem>>, vector<32x128xf32>
    %cst_56 = arith.constant dense<0.000000e+00> : vector<8x128xf32>
    %283 = tpu.matmul %281, %282, %cst_56 {dimension_numbers = #tpu.dot_dimension_numbers<[1], [0], [0], [1], [0, 0, 1, 1], [], []>} : vector<8x32xf32>, vector<32x128xf32>, vector<8x128xf32> -> vector<8x128xf32>
    %c0_57 = arith.constant 0 : index
    %c0_58 = arith.constant 0 : index
    %284 = vector.load %arg9[%c0_57, %c0_58] : memref<1x128xf32, #tpu.memory_space<vmem>>, vector<1x128xf32>
    %285 = vector.broadcast %284 : vector<1x128xf32> to vector<8x128xf32>
    %286 = arith.addf %283, %285 : vector<8x128xf32>
    %c0_59 = arith.constant 0 : index
    %c0_60 = arith.constant 0 : index
    %287 = vector.load %arg10[%c0_59, %c0_60] : memref<8x128xf32, #tpu.memory_space<vmem>>, vector<8x128xf32>
    tpu.vector_store %arg10[%c0_59, %c0_60], %286 {strides = array<i32>} : memref<8x128xf32, #tpu.memory_space<vmem>>, vector<8x128xf32>,
    return
  }
}

</mosaic_0001>

<bundles_post_ra>
// kernel: tpu_custom_call.1
= control target key start
LH: loop header
LB: loop body
LE: loop exit
PB: predicated region body
PF: predicated region fallthrough
CT: control target
= control target key end

     0   :  { %15 = vsyncpa [#allocation3], 0  ;;  %s1614_s0 = inlined_call_operand.vmem [shape: f32[48,2], index: 0, kind: input, shape index: {}]   ;;  %s1615_s1 = inlined_call_operand.vmem [shape: f32[2,16], index: 1, kind: input, shape index: {}]   ;;  %s1616_s2 = inlined_call_operand.vmem [shape: f32[1,16], index: 2, kind: input, shape index: {}]   ;;  %s1617_s3 = inlined_call_operand.vmem [shape: f32[16,128], index: 3, kind: input, shape index: {}]   ;;  %s1618_s4 = inlined_call_operand.vmem [shape: f32[32,128], index: 4, kind: input, shape index: {}]   ;;  %s1619_s5 = inlined_call_operand.vmem [shape: f32[1,128], index: 5, kind: input, shape index: {}]   ;;  %s1620_s6 = inlined_call_operand.hbm [shape: f32[64,128], index: 6, kind: input, shape index: {}]   ;;  %s1621_s7 = inlined_call_operand.vmem [shape: f32[1,128], index: 7, kind: input, shape index: {}]   ;;  %s1622_s8 = inlined_call_operand.hbm [shape: f32[32,128], index: 8, kind: input, shape index: {}]   ;;  %s1623_s9 = inlined_call_operand.vmem [shape: f32[1,128], index: 9, kind: input, shape index: {}]   ;;  %s1624_s10 = inlined_call_operand.hbm [shape: f32[8,128], index: 10, kind: output, shape index: {}]  }
   0x1   :  { %16 = vsyncpa [#allocation6], 0 }
   0x2   :  { %17 = vsyncpa [#allocation4], 0  ;;  %s34_s15 = sshll.u32 %s1620_s6, 4  ;;  %s1263_s16 = smov [#allocation2]   ;;  %s35_s15 = int_to_ptr.hbm [resolvable:$true] %s34_s15 }
   0x3   :  { %s36_s17 = sshll.u32 %s1263_s16, 4  ;;  %s49_s20 = sshll.u32 %s1622_s8, 4  ;;  %s37_s17 = int_to_ptr.vmem [resolvable:$true] %s36_s17  ;;  %s50_s20 = int_to_ptr.hbm [resolvable:$true] %s49_s20 }
   0x4   :  { %s1264_s21 = smov 128   ;;  %s1265_s22 = smov 8  }
   0x5   :  { %42 = dma.hbm_to_vmem [thread:$0]  %s35_s15, 1024, %s37_s17, [#allocation3], %s1264_s21, %s1264_s21, %s1265_s22  }
   0x6   :  { %s1266_s23 = smov [#allocation5]  }
   0x7   :  { %s51_s24 = sshll.u32 %s1266_s23, 4  ;;  %s52_s24 = int_to_ptr.vmem [resolvable:$true] %s51_s24 }
   0x8   :  { %57 = dma.hbm_to_vmem [thread:$0]  %s50_s20, 512, %s52_s24, [#allocation6], %s1264_s21, %s1264_s21, %s1265_s22  }
   0x9   :  { %1257 = dma.done.wait [#allocation3], 1024  }
   0xa   :  { %1258 = vsyncadd [#allocation3], 4294966272 }
   0xb   :  { %1259 = dma.done.wait [#allocation6], 512  }
   0xc   :  { %1260 = vsyncadd [#allocation6], 4294966784  ;;  %v1267_v0 = vmov 0   ;;  %v1268_v1 = vmov 1   ;;  %v68_v2 = vld [vmem:[%s1614_s0] sm:$0xff]  ;;  %v1346_v3 = vld [vmem:[%s1618_s4 + $0x18] sm:$0xff] }
   0xd   :  { %1099 = vset.pattern.permute.xlu0 %v1267_v0  ;;  %1102 = vset.pattern.permute.xlu1 %v1268_v1  ;;  %v166_v4 = vld [vmem:[%s1617_s3 + $0x8] sm:$0xff]  ;;  %v1354_v5 = vld [vmem:[%s1618_s4 + $0x10] sm:$0xff]  ;;  %v165_v6 = vld [vmem:[%s1617_s3] sm:$0xff]  ;;  %v1269_v9 = vmov 0.0   ;;  %vm171_vm0 = vcmask 130048   ;;  %s1270_s20 = smov 32  }
   0xe   :  { %1101 = vset.pattern.permute.xlu2 %v1267_v0  ;;  %77 = vperm.xlu0 %1099, %v68_v2   ;;  %v1363_v7 = vld [vmem:[%s1618_s4 + $0x8] sm:$0xff]  ;;  %v1372_v8 = vld [vmem:[%s1618_s4] sm:$0xff]  ;;  %s1272_s22 = smov 96   ;;  %v1410_v45 = vld [vmem:[#allocation2 + $0x38] sm:$0xff]  ;;  %vm241_vm5 = vcmask 261120   ;;  %vm309_vm6 = vcmask 523264  }
   0xf   :  { %257 = vmatpush.msra.mxu1 %v1346_v3  ;;  %204 = vmatpush.msra.mxu0 %v166_v4  ;;  %v74_v11 = vld [vmem:[%s1615_s1] sm:$0x3]  ;;  %v69_v41 = vld [vmem:[%s1614_s0 + $0x8] sm:$0xff]  ;;  %v1412_v46 = vld [vmem:[#allocation2 + $0x30] sm:$0xff]  ;;  %s1273_s11 = smov [#allocation7]   ;;  %s1047_s15 = sshll.u32 %s1624_s10, 4  ;;  %s1048_s15 = int_to_ptr.hbm [resolvable:$true] %s1047_s15 }
  0x10   :  { %385 = vmatpush.msra.mxu3 %v1346_v3  ;;  %v1384_v12 = vperm.slane %v74_v11, 0  ;;  %v1386_v13 = vperm.slane %v74_v11, 1  ;;  %v1393_v17 = vld [vmem:[%s1616_s2] ss:$0 sm:$0xff]  ;;  %s1271_s2 = smov 64   ;;  %321 = vmatpush.msra.mxu2 %v1410_v45  ;;  %v1416_v47 = vld [vmem:[#allocation2 + $0x28] sm:$0xff] }
  0x11   :  { %258 = vmatpush.msra.mxu1 %v1354_v5  ;;  %205 = vmatpush.msra.mxu0 %v165_v6  ;;  %v1400_v21 = vld [vmem:[%s1619_s5] ss:$0 sm:$0xff]  ;;  %v1426_v49 = vld [vmem:[#allocation2 + $0x18] sm:$0xff]  ;;  %v231_v50 = vld [vmem:[#allocation2 + $0x10] sm:$0xff]  ;;  %s1045_s12 = sshll.u32 %s1273_s11, 4  ;;  %s1046_s12 = int_to_ptr.vmem [resolvable:$true] %s1045_s12 }
  0x12   :  { %386 = vmatpush.msra.mxu3 %v1354_v5  ;;  %322 = vmatpush.msra.mxu2 %v1412_v46  ;;  %v1424_v48 = vld [vmem:[#allocation2 + $0x20] sm:$0xff]  ;;  %v230_v51 = vld [vmem:[#allocation2 + $0x8] sm:$0xff] }
  0x13   :  { %259 = vmatpush.msra.mxu1 %v1363_v7  ;;  %956 = vmatpush.msrb.mxu0 %v1410_v45 }
  0x14   :  { %387 = vmatpush.msra.mxu3 %v1363_v7  ;;  %323 = vmatpush.msra.mxu2 %v1416_v47 }
  0x15   :  { %260 = vmatpush.msra.mxu1 %v1372_v8  ;;  %957 = vmatpush.msrb.mxu0 %v1412_v46 }
  0x16   :  { %1100 = vset.pattern.permute.xlu0 %v1268_v1  ;;  %261 = vmatmul.f32.vlgmr.msra.gmra.mxu1 %v1269_v9 }
  0x17   :  { %113 = vperm.xlu0 %1100, %v68_v2   ;;  %388 = vmatpush.msra.mxu3 %v1372_v8  ;;  %v229_v2 = vld [vmem:[#allocation2] sm:$0xff] }
  0x18   :  { %448 = vmatpush.msrb.mxu1 %v1410_v45  ;;  %958 = vmatpush.msrb.mxu0 %v1416_v47 }
  0x19   :  { %512 = vmatpush.msrb.mxu3 %v1346_v3  ;;  %324 = vmatpush.msra.mxu2 %v1424_v48 }
  0x1a   :  { %449 = vmatpush.msrb.mxu1 %v1412_v46  ;;  %959 = vmatpush.msrb.mxu0 %v1424_v48 }
  0x1b   :  { %513 = vmatpush.msrb.mxu3 %v1354_v5  ;;  %325 = vmatpush.msra.mxu2 %v1426_v49 }
  0x1c   :  { %450 = vmatpush.msrb.mxu1 %v1416_v47  ;;  %960 = vmatpush.msrb.mxu0 %v1426_v49 }
  0x1d   :  { %514 = vmatpush.msrb.mxu3 %v1363_v7  ;;  %326 = vmatpush.msra.mxu2 %v231_v50 }
  0x1e   :  { %451 = vmatpush.msrb.mxu1 %v1424_v48  ;;  %961 = vmatpush.msrb.mxu0 %v231_v50 }
  0x1f   :  { %1103 = vset.pattern.permute.xlu0 %v1267_v0  ;;  %515 = vmatpush.msrb.mxu3 %v1372_v8 }
  0x20   :  { %452 = vmatpush.msrb.mxu1 %v1426_v49  ;;  %327 = vmatpush.msra.mxu2 %v230_v51 }
  0x21   :  { %962 = vmatpush.msrb.mxu0 %v230_v51 }
  0x22   :  { %453 = vmatpush.msrb.mxu1 %v231_v50  ;;  %328 = vmatpush.msra.mxu2 %v229_v2 }
  0x23   :  { %963 = vmatpush.msrb.mxu0 %v229_v2 }
  0x24   :  { %454 = vmatpush.msrb.mxu1 %v230_v51  ;;  %575 = vmatpush.msrb.mxu2 %v1410_v45 }
  0x26   :  { %455 = vmatpush.msrb.mxu1 %v229_v2  ;;  %576 = vmatpush.msrb.mxu2 %v1412_v46 }
  0x28   :  { %702 = vmatpush.msra.mxu1 %v1410_v45  ;;  %577 = vmatpush.msrb.mxu2 %v1416_v47 }
  0x2a   :  { %703 = vmatpush.msra.mxu1 %v1412_v46  ;;  %578 = vmatpush.msrb.mxu2 %v1424_v48 }
  0x2c   :  { %704 = vmatpush.msra.mxu1 %v1416_v47  ;;  %579 = vmatpush.msrb.mxu2 %v1426_v49 }
  0x2e   :  { %705 = vmatpush.msra.mxu1 %v1424_v48  ;;  %580 = vmatpush.msrb.mxu2 %v231_v50 }
  0x30   :  { %706 = vmatpush.msra.mxu1 %v1426_v49  ;;  %581 = vmatpush.msrb.mxu2 %v230_v51 }
  0x32   :  { %707 = vmatpush.msra.mxu1 %v231_v50  ;;  %582 = vmatpush.msrb.mxu2 %v229_v2 }
  0x34   :  { %708 = vmatpush.msra.mxu1 %v230_v51 }
  0x36   :  { %709 = vmatpush.msra.mxu1 %v229_v2 }
  0x80   :  { %v78_v10 = vpop.permute.xlu0 %77 }
  0x81   :  { %v106_v15 = vmul.f32 %v1384_v12, %v78_v10 }
  0x89   :  { %v114_v14 = vpop.permute.xlu0 %113 }
  0x8a   :  { %v137_v16 = vmul.f32 %v1386_v13, %v114_v14 }
  0x8c   :  { %v143_v18 = vadd.f32 %v137_v16, %v106_v15 }
  0x8e   :  { %v153_v19 = vadd.f32 %v1393_v17, %v143_v18 }
  0x90   :  { %v159_v20 = vmax.f32 %v153_v19, 0.0  ;;  %v70_v19 = vld [vmem:[%s1614_s0 + $0x10] sm:$0xff] }
  0x92   :  { %1058 = vmatmul.msk.f32.vlgmr.msra.gmra.mxu0 %vm171_vm0, %v159_v20 }
  0x93   :  { %v262_v23 = vpop.f32.mrf.mxu1 }
 0x10f   :  { %v207_v22 = vpop.f32.mrf.mxu0 }
 0x110   :  { %v208_v24 = vadd.f32 %v1400_v21, %v207_v22 }
 0x112   :  { %v265_v25 = vadd.f32 %v262_v23, %v208_v24 }
 0x114   :  { %286 = vrot.lane.b32.xlu1 %v265_v25, %s1270_s20  ;;  %v1064_v26 = vmul.f32 -1.442695, %v265_v25 }
 0x116   :  { %1113 = vpow2.f32 %v1064_v26 }
 0x11c   :  { %v1114_v27 = vpop.eup %1113 }
 0x11d   :  { %v269_v28 = vadd.f32 1.0, %v1114_v27 }
 0x11f   :  { %1115 = vrcp.f32 %v269_v28  ;;  %v281_v34 = vand.u32 2147483648, %v269_v28  ;;  %vm275_vm2 = vweird.f32 %v269_v28  ;;  %v279_v35 = vand.u32 2147483647, %v269_v28 }
 0x121   :  { %v282_v37 = vor.u32 1.1754944e-38, %v281_v34  ;;  %vm280_vm4 = vcmp.eq.f32.partialorder %v279_v35, 8.507059e+37 }
 0x125   :  { %v1116_v29 = vpop.eup %1115 }
 0x126   :  { %v271_v30 = vmul.f32 %v1116_v29, %v269_v28  ;;  %vm276_vm1 = vweird.f32 %v1116_v29 }
 0x127   :  { %vm277_vm3 = vmor %vm275_vm2, %vm276_vm1 }
 0x128   :  { %v272_v31 = vsub.f32 1.0, %v271_v30 }
 0x12a   :  { %v273_v32 = vmul.f32 %v1116_v29, %v272_v31 }
 0x12c   :  { %v274_v33 = vadd.f32 %v1116_v29, %v273_v32 }
 0x12e   :  { %v278_v36 = vsel %vm277_vm3, %v1116_v29, %v274_v33  ;;  %v1475_v33 = vld [vmem:[%s1621_s7] ss:$0 sm:$0xff] }
 0x12f   :  { %v283_v39 = vsel %vm280_vm4, %v282_v37, %v278_v36 }
 0x130   :  { %v296_v52 = vsub.f32 1.0, %v283_v39  ;;  %v302_v54 = vmul.f32 0.0, %v283_v39 }
 0x186   :  { %v287_v38 = vpop.permute.xlu1 %286 }
 0x187   :  { %v289_v40 = vmul.f32 %v287_v38, %v283_v39 }
 0x189   :  { %291 = vrot.lane.b32.xlu1 %v289_v40, %s1271_s2 }
 0x191   :  { %117 = vperm.xlu1 %1102, %v69_v41  }
 0x1fb   :  { %v292_v42 = vpop.permute.xlu1 %291 }
 0x1fc   :  { %v294_v43 = vadd.f32 %v292_v42, %v265_v25 }
 0x1fe   :  { %1117 = vtanh.f32 %v294_v43 }
 0x203   :  { %v118_v58 = vpop.permute.xlu1 %117 }
 0x204   :  { %v1118_v44 = vpop.eup %1117  ;;  %v138_v60 = vmul.f32 %v1386_v13, %v118_v58 }
 0x205   :  { %298 = vrot.lane.b32.xlu2 %v1118_v44, %s1272_s22 }
 0x20d   :  { %82 = vperm.xlu2 %1101, %v69_v41  }
 0x215   :  { %1105 = vset.pattern.permute.xlu2 %v1268_v1 }
 0x25f   :  { %v299_v53 = vpop.permute.xlu2 %298 }
 0x260   :  { %v301_v55 = vmul.f32 %v299_v53, %v296_v52 }
 0x262   :  { %v1435_v56 = vadd.f32 %v302_v54, %v301_v55 }
 0x264   :  { %305 = vrot.lane.b32.xlu2 %v1435_v56, %s1272_s22 }
 0x267   :  { %v83_v57 = vpop.permute.xlu2 %82 }
 0x268   :  { %v107_v59 = vmul.f32 %v1384_v12, %v83_v57 }
 0x26a   :  { %v144_v61 = vadd.f32 %v138_v60, %v107_v59 }
 0x26c   :  { %v154_v62 = vadd.f32 %v1393_v17, %v144_v61 }
 0x26e   :  { %v160_v63 = vmax.f32 %v154_v62, 0.0 }
 0x270   :  { %1059 = vmatmul.msk.f32.gmra.mxu0 %vm171_vm0, %v160_v63 }
 0x2be   :  { %v306_v4 = vpop.permute.xlu2 %305 }
 0x2bf   :  { %1067 = vmatmul.msk.f32.vlgmr.msra.gmra.mxu3 %vm241_vm5, %v306_v4  ;;  %v308_v6 = vsel %vm241_vm5, %v306_v4, 0.0 }
 0x2c0   :  { %1065 = vmatmul.msk.f32.vlgmr.msra.gmra.mxu2 %vm309_vm6, %v308_v6  ;;  %639 = vmatpush.msra.mxu3 %v1346_v3 }
 0x2c1   :  { %829 = vmatpush.msra.mxu2 %v1410_v45 }
 0x2c2   :  { %640 = vmatpush.msra.mxu3 %v1354_v5 }
 0x2c3   :  { %830 = vmatpush.msra.mxu2 %v1412_v46 }
 0x2c4   :  { %641 = vmatpush.msra.mxu3 %v1363_v7 }
 0x2c5   :  { %831 = vmatpush.msra.mxu2 %v1416_v47 }
 0x2c6   :  { %642 = vmatpush.msra.mxu3 %v1372_v8 }
 0x2c7   :  { %832 = vmatpush.msra.mxu2 %v1424_v48 }
 0x2c9   :  { %833 = vmatpush.msra.mxu2 %v1426_v49 }
 0x2cb   :  { %834 = vmatpush.msra.mxu2 %v231_v50 }
 0x2cd   :  { %835 = vmatpush.msra.mxu2 %v230_v51 }
 0x2cf   :  { %836 = vmatpush.msra.mxu2 %v229_v2 }
 0x2ed   :  { %v210_v9 = vpop.f32.mrf.mxu0 }
 0x2ee   :  { %v211_v10 = vadd.f32 %v1400_v21, %v210_v9 }
 0x342   :  { %v390_v11 = vpop.f32.mrf.mxu3 }
 0x343   :  { %v393_v14 = vadd.f32 %v390_v11, %v211_v10  ;;  %v330_v34 = vpop.f32.mrf.mxu2 }
 0x344   :  { %v331_v35 = vadd.f32 %v1475_v33, %v330_v34 }
 0x345   :  { %414 = vrot.lane.b32.xlu0 %v393_v14, %s1270_s20  ;;  %v1068_v15 = vmul.f32 -1.442695, %v393_v14 }
 0x346   :  { %v1066_v46 = vmul.f32 -1.442695, %v331_v35 }
 0x347   :  { %1119 = vpow2.f32 %v1068_v15 }
 0x34d   :  { %v1120_v16 = vpop.eup %1119  ;;  %87 = vperm.xlu0 %1103, %v70_v19  }
 0x34e   :  { %v397_v18 = vadd.f32 1.0, %v1120_v16 }
 0x350   :  { %1121 = vrcp.f32 %v397_v18  ;;  %v409_v26 = vand.u32 2147483648, %v397_v18  ;;  %vm403_vm8 = vweird.f32 %v397_v18  ;;  %v407_v27 = vand.u32 2147483647, %v397_v18 }
 0x352   :  { %v410_v29 = vor.u32 1.1754944e-38, %v409_v26  ;;  %vm408_vm10 = vcmp.eq.f32.partialorder %v407_v27, 8.507059e+37 }
 0x355   :  { %1107 = vset.pattern.permute.xlu0 %v1268_v1 }
 0x356   :  { %v1122_v20 = vpop.eup %1121 }
 0x357   :  { %v399_v22 = vmul.f32 %v1122_v20, %v397_v18  ;;  %vm404_vm7 = vweird.f32 %v1122_v20 }
 0x358   :  { %vm405_vm9 = vmor %vm403_vm8, %vm404_vm7 }
 0x359   :  { %v400_v23 = vsub.f32 1.0, %v399_v22 }
 0x35b   :  { %v401_v24 = vmul.f32 %v1122_v20, %v400_v23 }
 0x35d   :  { %v402_v25 = vadd.f32 %v1122_v20, %v401_v24 }
 0x35f   :  { %v406_v28 = vsel %vm405_vm9, %v1122_v20, %v402_v25 }
 0x360   :  { %v411_v31 = vsel %vm408_vm10, %v410_v29, %v406_v28  ;;  %v71_v29 = vld [vmem:[%s1614_s0 + $0x18] sm:$0xff] }
 0x361   :  { %v424_v53 = vsub.f32 1.0, %v411_v31  ;;  %v430_v55 = vmul.f32 %v411_v31, %v1435_v56 }
 0x3b7   :  { %v415_v30 = vpop.permute.xlu0 %414 }
 0x3b8   :  { %v417_v32 = vmul.f32 %v415_v30, %v411_v31 }
 0x3ba   :  { %419 = vrot.lane.b32.xlu1 %v417_v32, %s1271_s2 }
 0x3bf   :  { %v88_v38 = vpop.permute.xlu0 %87 }
 0x3c0   :  { %v108_v39 = vmul.f32 %v1384_v12, %v88_v38 }
 0x3c2   :  { %121 = vperm.xlu1 %1102, %v70_v19  }
 0x3ca   :  { %353 = vrot.lane.b32.xlu1 %v331_v35, %s1270_s20 }
 0x3cb   :  { %1104 = vset.pattern.permute.xlu1 %v1267_v0 }
 0x42c   :  { %v420_v36 = vpop.permute.xlu1 %419 }
 0x42d   :  { %v422_v37 = vadd.f32 %v420_v36, %v393_v14 }
 0x42f   :  { %1123 = vtanh.f32 %v422_v37 }
 0x430   :  { %1125 = vpow2.f32 %v1066_v46 }
 0x434   :  { %v122_v40 = vpop.permute.xlu1 %121 }
 0x435   :  { %v1124_v41 = vpop.eup %1123  ;;  %v139_v42 = vmul.f32 %v1386_v13, %v122_v40 }
 0x436   :  { %426 = vrot.lane.b32.xlu2 %v1124_v41, %s1272_s22  ;;  %v1126_v47 = vpop.eup %1125 }
 0x437   :  { %v145_v43 = vadd.f32 %v139_v42, %v108_v39  ;;  %v336_v48 = vadd.f32 1.0, %v1126_v47 }
 0x439   :  { %v155_v44 = vadd.f32 %v1393_v17, %v145_v43  ;;  %1127 = vrcp.f32 %v336_v48  ;;  %v348_v60 = vand.u32 2147483648, %v336_v48  ;;  %vm342_vm12 = vweird.f32 %v336_v48 }
 0x43a   :  { %v346_v61 = vand.u32 2147483647, %v336_v48 }
 0x43b   :  { %v161_v45 = vmax.f32 %v155_v44, 0.0  ;;  %v349_v63 = vor.u32 1.1754944e-38, %v348_v60 }
 0x43c   :  { %v354_v2 = vpop.permute.xlu1 %353  ;;  %vm347_vm14 = vcmp.eq.f32.partialorder %v346_v61, 8.507059e+37 }
 0x43d   :  { %1060 = vmatmul.msk.f32.gmra.mxu0 %vm171_vm0, %v161_v45 }
 0x43f   :  { %v1128_v49 = vpop.eup %1127 }
 0x440   :  { %v338_v50 = vmul.f32 %v1128_v49, %v336_v48  ;;  %vm343_vm11 = vweird.f32 %v1128_v49 }
 0x441   :  { %vm344_vm13 = vmor %vm342_vm12, %vm343_vm11 }
 0x442   :  { %v339_v51 = vsub.f32 1.0, %v338_v50 }
 0x444   :  { %v340_v52 = vmul.f32 %v1128_v49, %v339_v51 }
 0x446   :  { %v341_v58 = vadd.f32 %v1128_v49, %v340_v52 }
 0x448   :  { %v345_v62 = vsel %vm344_vm13, %v1128_v49, %v341_v58 }
 0x449   :  { %v350_v4 = vsel %vm347_vm14, %v349_v63, %v345_v62 }
 0x44a   :  { %v356_v6 = vmul.f32 %v354_v2, %v350_v4  ;;  %v363_v16 = vsub.f32 1.0, %v350_v4  ;;  %v369_v22 = vmul.f32 0.0, %v350_v4 }
 0x490   :  { %v427_v54 = vpop.permute.xlu2 %426 }
 0x491   :  { %v429_v57 = vmul.f32 %v427_v54, %v424_v53 }
 0x493   :  { %v1486_v59 = vadd.f32 %v430_v55, %v429_v57 }
 0x495   :  { %433 = vrot.lane.b32.xlu2 %v1486_v59, %s1272_s22 }
 0x49d   :  { %358 = vrot.lane.b32.xlu2 %v356_v6, %s1271_s2 }
 0x4ba   :  { %v213_v14 = vpop.f32.mrf.mxu0 }
 0x4bb   :  { %v214_v15 = vadd.f32 %v1400_v21, %v213_v14 }
 0x4ef   :  { %v434_v56 = vpop.permute.xlu2 %433 }
 0x4f0   :  { %1071 = vmatmul.msk.f32.vlgmr.msrb.gmra.mxu3 %vm241_vm5, %v434_v56 }
 0x4f1   :  { %766 = vmatpush.msrb.mxu3 %v1346_v3 }
 0x4f3   :  { %767 = vmatpush.msrb.mxu3 %v1354_v5 }
 0x4f5   :  { %768 = vmatpush.msrb.mxu3 %v1363_v7 }
 0x4f7   :  { %v359_v9 = vpop.permute.xlu2 %358  ;;  %769 = vmatpush.msrb.mxu3 %v1372_v8 }
 0x4f8   :  { %v361_v10 = vadd.f32 %v359_v9, %v331_v35 }
 0x4fa   :  { %1129 = vtanh.f32 %v361_v10 }
 0x500   :  { %v1130_v11 = vpop.eup %1129 }
 0x501   :  { %365 = vrot.lane.b32.xlu0 %v1130_v11, %s1272_s22 }
 0x573   :  { %v517_v18 = vpop.f32.mrf.mxu3  ;;  %v366_v19 = vpop.permute.xlu0 %365 }
 0x574   :  { %v520_v20 = vadd.f32 %v517_v18, %v214_v15  ;;  %v368_v23 = vmul.f32 %v366_v19, %v363_v16 }
 0x576   :  { %v1498_v24 = vadd.f32 %v369_v22, %v368_v23  ;;  %541 = vrot.lane.b32.xlu1 %v520_v20, %s1270_s20  ;;  %v1072_v26 = vmul.f32 -1.442695, %v520_v20 }
 0x578   :  { %v436_v25 = vsel %vm241_vm5, %v434_v56, %v1498_v24  ;;  %1131 = vpow2.f32 %v1072_v26 }
 0x579   :  { %1069 = vmatmul.msk.f32.vlgmr.msrb.gmra.mxu1 %vm309_vm6, %v436_v25 }
 0x57e   :  { %v1132_v27 = vpop.eup %1131  ;;  %92 = vperm.xlu1 %1104, %v71_v29  }
 0x57f   :  { %v524_v28 = vadd.f32 1.0, %v1132_v27 }
 0x581   :  { %1133 = vrcp.f32 %v524_v28  ;;  %v536_v36 = vand.u32 2147483648, %v524_v28  ;;  %vm530_vm1 = vweird.f32 %v524_v28  ;;  %v534_v37 = vand.u32 2147483647, %v524_v28 }
 0x583   :  { %v537_v39 = vor.u32 1.1754944e-38, %v536_v36  ;;  %vm535_vm3 = vcmp.eq.f32.partialorder %v534_v37, 8.507059e+37 }
 0x587   :  { %v1134_v30 = vpop.eup %1133 }
 0x588   :  { %v526_v31 = vmul.f32 %v1134_v30, %v524_v28  ;;  %vm531_vm15 = vweird.f32 %v1134_v30 }
 0x589   :  { %vm532_vm2 = vmor %vm530_vm1, %vm531_vm15 }
 0x58a   :  { %v527_v32 = vsub.f32 1.0, %v526_v31 }
 0x58c   :  { %v528_v34 = vmul.f32 %v1134_v30, %v527_v32 }
 0x58e   :  { %v529_v35 = vadd.f32 %v1134_v30, %v528_v34 }
 0x590   :  { %v533_v38 = vsel %vm532_vm2, %v1134_v30, %v529_v35 }
 0x591   :  { %v538_v40 = vsel %vm535_vm3, %v537_v39, %v533_v38 }
 0x592   :  { %v551_v6 = vsub.f32 1.0, %v538_v40  ;;  %v557_v9 = vmul.f32 %v538_v40, %v1486_v59 }
 0x5e8   :  { %v542_v41 = vpop.permute.xlu1 %541 }
 0x5e9   :  { %v544_v42 = vmul.f32 %v542_v41, %v538_v40 }
 0x5eb   :  { %546 = vrot.lane.b32.xlu2 %v544_v42, %s1271_s2 }
 0x5f0   :  { %v93_v55 = vpop.permute.xlu1 %92 }
 0x5f1   :  { %v109_v18 = vmul.f32 %v1384_v12, %v93_v55  ;;  %v72_v55 = vld [vmem:[%s1614_s0 + $0x20] sm:$0xff] }
 0x5f3   :  { %125 = vperm.xlu2 %1105, %v71_v29  }
 0x5f6   :  { %v457_v43 = vpop.f32.mrf.mxu1 }
 0x5f7   :  { %v458_v44 = vadd.f32 %v1475_v33, %v457_v43 }
 0x5f9   :  { %480 = vrot.lane.b32.xlu1 %v458_v44, %s1270_s20  ;;  %v1070_v45 = vmul.f32 -1.442695, %v458_v44 }
 0x5fb   :  { %1106 = vset.pattern.permute.xlu2 %v1267_v0  ;;  %1135 = vpow2.f32 %v1070_v45 }
 0x601   :  { %v1136_v48 = vpop.eup %1135 }
 0x602   :  { %v463_v49 = vadd.f32 1.0, %v1136_v48 }
 0x604   :  { %v475_v58 = vand.u32 2147483648, %v463_v49  ;;  %vm469_vm7 = vweird.f32 %v463_v49  ;;  %v473_v0 = vand.u32 2147483647, %v463_v49 }
 0x606   :  { %v476_v61 = vor.u32 1.1754944e-38, %v475_v58  ;;  %vm474_vm9 = vcmp.eq.f32.partialorder %v473_v0, 8.507059e+37 }
 0x645   :  { %v547_v46 = vpop.permute.xlu2 %546 }
 0x646   :  { %v549_v47 = vadd.f32 %v547_v46, %v520_v20 }
 0x648   :  { %1137 = vtanh.f32 %v549_v47 }
 0x649   :  { %1139 = vrcp.f32 %v463_v49 }
 0x64d   :  { %v126_v4 = vpop.permute.xlu2 %125 }
 0x64e   :  { %v1138_v50 = vpop.eup %1137  ;;  %v140_v19 = vmul.f32 %v1386_v13, %v126_v4 }
 0x64f   :  { %553 = vrot.lane.b32.xlu0 %v1138_v50, %s1272_s22  ;;  %v1140_v51 = vpop.eup %1139 }
 0x650   :  { %v465_v52 = vmul.f32 %v1140_v51, %v463_v49  ;;  %vm470_vm4 = vweird.f32 %v1140_v51  ;;  %v146_v20 = vadd.f32 %v140_v19, %v109_v18 }
 0x651   :  { %vm471_vm8 = vmor %vm469_vm7, %vm470_vm4 }
 0x652   :  { %v466_v53 = vsub.f32 1.0, %v465_v52  ;;  %v156_v22 = vadd.f32 %v1393_v17, %v146_v20 }
 0x654   :  { %v467_v54 = vmul.f32 %v1140_v51, %v466_v53  ;;  %v162_v59 = vmax.f32 %v156_v22, 0.0 }
 0x656   :  { %v468_v57 = vadd.f32 %v1140_v51, %v467_v54  ;;  %1061 = vmatmul.msk.f32.gmra.mxu0 %vm171_vm0, %v162_v59 }
 0x658   :  { %v472_v60 = vsel %vm471_vm8, %v1140_v51, %v468_v57 }
 0x659   :  { %v477_v62 = vsel %vm474_vm9, %v476_v61, %v472_v60 }
 0x65a   :  { %v490_v25 = vsub.f32 1.0, %v477_v62  ;;  %v496_v27 = vmul.f32 %v477_v62, %v1498_v24 }
 0x66b   :  { %v481_v63 = vpop.permute.xlu1 %480 }
 0x66c   :  { %v483_v2 = vmul.f32 %v481_v63, %v477_v62 }
 0x66e   :  { %485 = vrot.lane.b32.xlu2 %v483_v2, %s1271_s2 }
 0x6c1   :  { %v554_v56 = vpop.permute.xlu0 %553 }
 0x6c2   :  { %v556_v10 = vmul.f32 %v554_v56, %v551_v6 }
 0x6c4   :  { %v1514_v11 = vadd.f32 %v557_v9, %v556_v10 }
 0x6c6   :  { %560 = vrot.lane.b32.xlu0 %v1514_v11, %s1272_s22 }
 0x6c8   :  { %v486_v14 = vpop.permute.xlu2 %485 }
 0x6c9   :  { %v488_v15 = vadd.f32 %v486_v14, %v458_v44 }
 0x6cb   :  { %1141 = vtanh.f32 %v488_v15 }
 0x6d1   :  { %v1142_v16 = vpop.eup %1141 }
 0x6d2   :  { %492 = vrot.lane.b32.xlu0 %v1142_v16, %s1272_s22 }
 0x6d3   :  { %v216_v31 = vpop.f32.mrf.mxu0 }
 0x738   :  { %v561_v23 = vpop.permute.xlu0 %560 }
 0x739   :  { %1075 = vmatmul.msk.f32.vlgmr.msra.gmra.mxu3 %vm241_vm5, %v561_v23 }
 0x73a   :  { %893 = vmatpush.msra.mxu3 %v1346_v3  ;;  %v217_v3 = vadd.f32 %v1400_v21, %v216_v31 }
 0x73c   :  { %894 = vmatpush.msra.mxu3 %v1354_v5 }
 0x73e   :  { %895 = vmatpush.msra.mxu3 %v1363_v7 }
 0x740   :  { %896 = vmatpush.msra.mxu3 %v1372_v8 }
 0x744   :  { %v493_v26 = vpop.permute.xlu0 %492 }
 0x745   :  { %v495_v28 = vmul.f32 %v493_v26, %v490_v25 }
 0x747   :  { %v1529_v29 = vadd.f32 %v496_v27, %v495_v28 }
 0x749   :  { %v563_v30 = vsel %vm241_vm5, %v561_v23, %v1529_v29 }
 0x74a   :  { %1073 = vmatmul.msk.f32.vlgmr.msrb.gmra.mxu2 %vm309_vm6, %v563_v30 }
 0x7bc   :  { %v644_v5 = vpop.f32.mrf.mxu3 }
 0x7bd   :  { %v647_v32 = vadd.f32 %v644_v5, %v217_v3 }
 0x7bf   :  { %668 = vrot.lane.b32.xlu1 %v647_v32, %s1270_s20  ;;  %v1076_v24 = vmul.f32 -1.442695, %v647_v32 }
 0x7c1   :  { %1143 = vpow2.f32 %v1076_v24 }
 0x7c7   :  { %v1144_v34 = vpop.eup %1143 }
 0x7c8   :  { %v651_v35 = vadd.f32 1.0, %v1144_v34 }
 0x7ca   :  { %1145 = vrcp.f32 %v651_v35  ;;  %v663_v44 = vand.u32 2147483648, %v651_v35  ;;  %vm657_vm11 = vweird.f32 %v651_v35  ;;  %v661_v46 = vand.u32 2147483647, %v651_v35 }
 0x7cc   :  { %v664_v48 = vor.u32 1.1754944e-38, %v663_v44  ;;  %vm662_vm13 = vcmp.eq.f32.partialorder %v661_v46, 8.507059e+37 }
 0x7cd   :  { %v584_v7 = vpop.f32.mrf.mxu2 }
 0x7ce   :  { %v585_v8 = vadd.f32 %v1475_v33, %v584_v7 }
 0x7d0   :  { %607 = vrot.lane.b32.xlu1 %v585_v8, %s1270_s20  ;;  %v1074_v36 = vmul.f32 -1.442695, %v585_v8  ;;  %v1146_v37 = vpop.eup %1145 }
 0x7d1   :  { %v653_v38 = vmul.f32 %v1146_v37, %v651_v35  ;;  %vm658_vm10 = vweird.f32 %v1146_v37 }
 0x7d2   :  { %1147 = vpow2.f32 %v1074_v36  ;;  %vm659_vm12 = vmor %vm657_vm11, %vm658_vm10 }
 0x7d3   :  { %v654_v41 = vsub.f32 1.0, %v653_v38 }
 0x7d5   :  { %v655_v42 = vmul.f32 %v1146_v37, %v654_v41 }
 0x7d7   :  { %v656_v43 = vadd.f32 %v1146_v37, %v655_v42 }
 0x7d8   :  { %v1148_v39 = vpop.eup %1147 }
 0x7d9   :  { %v590_v40 = vadd.f32 1.0, %v1148_v39  ;;  %v660_v47 = vsel %vm659_vm12, %v1146_v37, %v656_v43 }
 0x7da   :  { %v665_v50 = vsel %vm662_vm13, %v664_v48, %v660_v47 }
 0x7db   :  { %1149 = vrcp.f32 %v590_v40  ;;  %v602_v58 = vand.u32 2147483648, %v590_v40  ;;  %vm596_vm15 = vweird.f32 %v590_v40  ;;  %v600_v0 = vand.u32 2147483647, %v590_v40 }
 0x7dc   :  { %v678_v14 = vsub.f32 1.0, %v665_v50  ;;  %v684_v16 = vmul.f32 %v665_v50, %v1514_v11 }
 0x7dd   :  { %v603_v61 = vor.u32 1.1754944e-38, %v602_v58  ;;  %vm601_vm2 = vcmp.eq.f32.partialorder %v600_v0, 8.507059e+37 }
 0x7e1   :  { %v1150_v45 = vpop.eup %1149 }
 0x7e2   :  { %v592_v49 = vmul.f32 %v1150_v45, %v590_v40  ;;  %vm597_vm14 = vweird.f32 %v1150_v45 }
 0x7e3   :  { %vm598_vm1 = vmor %vm596_vm15, %vm597_vm14 }
 0x7e4   :  { %v593_v53 = vsub.f32 1.0, %v592_v49 }
 0x7e6   :  { %v594_v54 = vmul.f32 %v1150_v45, %v593_v53 }
 0x7e8   :  { %v595_v57 = vadd.f32 %v1150_v45, %v594_v54 }
 0x7ea   :  { %v599_v60 = vsel %vm598_vm1, %v1150_v45, %v595_v57 }
 0x7eb   :  { %v604_v62 = vsel %vm601_vm2, %v603_v61, %v599_v60 }
 0x7ec   :  { %v617_v28 = vsub.f32 1.0, %v604_v62  ;;  %v623_v31 = vmul.f32 %v604_v62, %v1529_v29  ;;  %v73_v29 = vld [vmem:[%s1614_s0 + $0x28] sm:$0xff] }
 0x831   :  { %v669_v51 = vpop.permute.xlu1 %668 }
 0x832   :  { %v671_v52 = vmul.f32 %v669_v51, %v665_v50 }
 0x834   :  { %673 = vrot.lane.b32.xlu2 %v671_v52, %s1271_s2 }
 0x83c   :  { %97 = vperm.xlu2 %1106, %v72_v55  }
 0x842   :  { %v608_v63 = vpop.permute.xlu1 %607 }
 0x843   :  { %v610_v2 = vmul.f32 %v608_v63, %v604_v62 }
 0x844   :  { %1108 = vset.pattern.permute.xlu2 %v1268_v1 }
 0x845   :  { %612 = vrot.lane.b32.xlu2 %v610_v2, %s1271_s2 }
 0x88e   :  { %v674_v4 = vpop.permute.xlu2 %673 }
 0x88f   :  { %v676_v6 = vadd.f32 %v674_v4, %v647_v32 }
 0x891   :  { %1151 = vtanh.f32 %v676_v6 }
 0x896   :  { %v98_v9 = vpop.permute.xlu2 %97 }
 0x897   :  { %v1152_v56 = vpop.eup %1151  ;;  %v110_v59 = vmul.f32 %v1384_v12, %v98_v9 }
 0x898   :  { %680 = vrot.lane.b32.xlu0 %v1152_v56, %s1272_s22 }
 0x89f   :  { %v613_v10 = vpop.permute.xlu2 %612 }
 0x8a0   :  { %129 = vperm.xlu0 %1107, %v72_v55   ;;  %v615_v19 = vadd.f32 %v613_v10, %v585_v8 }
 0x8a2   :  { %1153 = vtanh.f32 %v615_v19 }
 0x8a8   :  { %v1154_v1 = vpop.eup %1153 }
 0x90a   :  { %v681_v15 = vpop.permute.xlu0 %680 }
 0x90b   :  { %v683_v18 = vmul.f32 %v681_v15, %v678_v14 }
 0x90d   :  { %v1546_v20 = vadd.f32 %v684_v16, %v683_v18 }
 0x90f   :  { %687 = vrot.lane.b32.xlu1 %v1546_v20, %s1272_s22 }
 0x912   :  { %v130_v22 = vpop.permute.xlu0 %129 }
 0x913   :  { %v141_v23 = vmul.f32 %v1386_v13, %v130_v22 }
 0x915   :  { %v147_v25 = vadd.f32 %v141_v23, %v110_v59 }
 0x917   :  { %619 = vrot.lane.b32.xlu1 %v1154_v1, %s1272_s22  ;;  %v157_v26 = vadd.f32 %v1393_v17, %v147_v25 }
 0x919   :  { %v163_v11 = vmax.f32 %v157_v26, 0.0 }
 0x91b   :  { %1062 = vmatmul.msk.f32.gmra.mxu0 %vm171_vm0, %v163_v11 }
 0x981   :  { %v688_v27 = vpop.permute.xlu1 %687 }
 0x982   :  { %1079 = vmatmul.msk.f32.vlgmr.msrb.gmra.mxu3 %vm241_vm5, %v688_v27 }
 0x989   :  { %v620_v30 = vpop.permute.xlu1 %619 }
 0x98a   :  { %v622_v3 = vmul.f32 %v620_v30, %v617_v28 }
 0x98c   :  { %v1557_v5 = vadd.f32 %v623_v31, %v622_v3 }
 0x98e   :  { %v690_v32 = vsel %vm241_vm5, %v688_v27, %v1557_v5 }
 0x98f   :  { %1077 = vmatmul.msk.f32.vlgmr.msra.gmra.mxu1 %vm309_vm6, %v690_v32 }
 0x998   :  { %v219_v7 = vpop.f32.mrf.mxu0 }
 0x999   :  { %v220_v8 = vadd.f32 %v1400_v21, %v219_v7 }
 0xa05   :  { %v771_v24 = vpop.f32.mrf.mxu3 }
 0xa06   :  { %v774_v34 = vadd.f32 %v771_v24, %v220_v8 }
 0xa08   :  { %795 = vrot.lane.b32.xlu2 %v774_v34, %s1270_s20  ;;  %v1080_v37 = vmul.f32 -1.442695, %v774_v34 }
 0xa0a   :  { %1155 = vpow2.f32 %v1080_v37 }
 0xa0c   :  { %v711_v35 = vpop.f32.mrf.mxu1 }
 0xa0d   :  { %v712_v36 = vadd.f32 %v1475_v33, %v711_v35 }
 0xa0f   :  { %734 = vrot.lane.b32.xlu1 %v712_v36, %s1270_s20  ;;  %v1078_v43 = vmul.f32 -1.442695, %v712_v36 }
 0xa10   :  { %v1156_v38 = vpop.eup %1155 }
 0xa11   :  { %v778_v39 = vadd.f32 1.0, %v1156_v38 }
 0xa13   :  { %1157 = vrcp.f32 %v778_v39  ;;  %v790_v46 = vand.u32 2147483648, %v778_v39  ;;  %vm784_vm4 = vweird.f32 %v778_v39  ;;  %v788_v47 = vand.u32 2147483647, %v778_v39 }
 0xa14   :  { %1159 = vpow2.f32 %v1078_v43 }
 0xa15   :  { %v791_v50 = vor.u32 1.1754944e-38, %v790_v46  ;;  %vm789_vm8 = vcmp.eq.f32.partialorder %v788_v47, 8.507059e+37 }
 0xa17   :  { %102 = vperm.xlu1 %1104, %v73_v29  }
 0xa19   :  { %v1158_v40 = vpop.eup %1157 }
 0xa1a   :  { %v780_v41 = vmul.f32 %v1158_v40, %v778_v39  ;;  %vm785_vm3 = vweird.f32 %v1158_v40  ;;  %v1160_v48 = vpop.eup %1159 }
 0xa1b   :  { %vm786_vm7 = vmor %vm784_vm4, %vm785_vm3  ;;  %v717_v51 = vadd.f32 1.0, %v1160_v48 }
 0xa1c   :  { %v781_v42 = vsub.f32 1.0, %v780_v41 }
 0xa1d   :  { %1161 = vrcp.f32 %v717_v51  ;;  %v729_v61 = vand.u32 2147483648, %v717_v51  ;;  %vm723_vm10 = vweird.f32 %v717_v51  ;;  %v727_v62 = vand.u32 2147483647, %v717_v51 }
 0xa1e   :  { %v782_v44 = vmul.f32 %v1158_v40, %v781_v42 }
 0xa1f   :  { %v730_v2 = vor.u32 1.1754944e-38, %v729_v61  ;;  %vm728_vm12 = vcmp.eq.f32.partialorder %v727_v62, 8.507059e+37 }
 0xa20   :  { %v783_v45 = vadd.f32 %v1158_v40, %v782_v44 }
 0xa22   :  { %v787_v49 = vsel %vm786_vm7, %v1158_v40, %v783_v45 }
 0xa23   :  { %v792_v53 = vsel %vm789_vm8, %v791_v50, %v787_v49  ;;  %v1162_v55 = vpop.eup %1161 }
 0xa24   :  { %v719_v57 = vmul.f32 %v1162_v55, %v717_v51  ;;  %vm724_vm9 = vweird.f32 %v1162_v55  ;;  %v805_v19 = vsub.f32 1.0, %v792_v53  ;;  %v811_v22 = vmul.f32 %v792_v53, %v1546_v20 }
 0xa25   :  { %vm725_vm11 = vmor %vm723_vm10, %vm724_vm9 }
 0xa26   :  { %v720_v58 = vsub.f32 1.0, %v719_v57 }
 0xa28   :  { %v721_v0 = vmul.f32 %v1162_v55, %v720_v58 }
 0xa2a   :  { %v722_v60 = vadd.f32 %v1162_v55, %v721_v0 }
 0xa2c   :  { %v726_v63 = vsel %vm725_vm11, %v1162_v55, %v722_v60 }
 0xa2d   :  { %v731_v6 = vsel %vm728_vm12, %v730_v2, %v726_v63 }
 0xa2e   :  { %v744_v20 = vsub.f32 1.0, %v731_v6  ;;  %v750_v7 = vmul.f32 %v731_v6, %v1557_v5 }
 0xa62   :  { %v796_v52 = vpop.permute.xlu2 %795 }
 0xa63   :  { %v798_v54 = vmul.f32 %v796_v52, %v792_v53 }
 0xa65   :  { %800 = vrot.lane.b32.xlu0 %v798_v54, %s1271_s2 }
 0xa81   :  { %v735_v4 = vpop.permute.xlu1 %734 }
 0xa82   :  { %v737_v56 = vmul.f32 %v735_v4, %v731_v6 }
 0xa84   :  { %739 = vrot.lane.b32.xlu0 %v737_v56, %s1271_s2 }
 0xa89   :  { %v103_v25 = vpop.permute.xlu1 %102 }
 0xa8a   :  { %v111_v11 = vmul.f32 %v1384_v12, %v103_v25 }
 0xad7   :  { %v801_v9 = vpop.permute.xlu0 %800 }
 0xad8   :  { %v803_v10 = vadd.f32 %v801_v9, %v774_v34 }
 0xada   :  { %1163 = vtanh.f32 %v803_v10 }
 0xae0   :  { %v1164_v14 = vpop.eup %1163 }
 0xae1   :  { %807 = vrot.lane.b32.xlu2 %v1164_v14, %s1272_s22 }
 0xae9   :  { %133 = vperm.xlu2 %1108, %v73_v29  }
 0xaf6   :  { %v740_v15 = vpop.permute.xlu0 %739 }
 0xaf7   :  { %v742_v16 = vadd.f32 %v740_v15, %v712_v36 }
 0xaf9   :  { %1165 = vtanh.f32 %v742_v16 }
 0xaff   :  { %v1166_v18 = vpop.eup %1165 }
 0xb00   :  { %746 = vrot.lane.b32.xlu1 %v1166_v18, %s1272_s22 }
 0xb3b   :  { %v808_v1 = vpop.permute.xlu2 %807 }
 0xb3c   :  { %v810_v59 = vmul.f32 %v808_v1, %v805_v19 }
 0xb3e   :  { %v1574_v23 = vadd.f32 %v811_v22, %v810_v59 }
 0xb40   :  { %814 = vrot.lane.b32.xlu0 %v1574_v23, %s1272_s22 }
 0xb43   :  { %v134_v26 = vpop.permute.xlu2 %133 }
 0xb44   :  { %v142_v27 = vmul.f32 %v1386_v13, %v134_v26 }
 0xb46   :  { %v148_v28 = vadd.f32 %v142_v27, %v111_v11 }
 0xb48   :  { %v158_v30 = vadd.f32 %v1393_v17, %v148_v28 }
 0xb4a   :  { %v164_v31 = vmax.f32 %v158_v30, 0.0 }
 0xb4c   :  { %1063 = vmatmul.msk.f32.gmra.mxu0 %vm171_vm0, %v164_v31 }
 0xb72   :  { %v747_v3 = vpop.permute.xlu1 %746 }
 0xb73   :  { %v749_v32 = vmul.f32 %v747_v3, %v744_v20 }
 0xb75   :  { %v1583_v8 = vadd.f32 %v750_v7, %v749_v32 }
 0xbb2   :  { %v815_v24 = vpop.permute.xlu0 %814 }
 0xbb3   :  { %v817_v34 = vsel %vm241_vm5, %v815_v24, %v1583_v8  ;;  %1083 = vmatmul.msk.f32.vlgmr.msra.gmra.mxu3 %vm241_vm5, %v815_v24 }
 0xbb4   :  { %1081 = vmatmul.msk.f32.vlgmr.msra.gmra.mxu2 %vm309_vm6, %v817_v34 }
 0xbc9   :  { %v222_v12 = vpop.f32.mrf.mxu0 }
 0xbca   :  { %v223_v13 = vadd.f32 %v1400_v21, %v222_v12 }
 0xc36   :  { %v898_v17 = vpop.f32.mrf.mxu3 }
 0xc37   :  { %v901_v35 = vadd.f32 %v898_v17, %v223_v13  ;;  %v838_v36 = vpop.f32.mrf.mxu2 }
 0xc38   :  { %v839_v29 = vadd.f32 %v1475_v33, %v838_v36 }
 0xc39   :  { %922 = vrot.lane.b32.xlu2 %v901_v35, %s1270_s20  ;;  %v1084_v5 = vmul.f32 -1.442695, %v901_v35 }
 0xc3a   :  { %861 = vrot.lane.b32.xlu0 %v839_v29, %s1270_s20  ;;  %v1082_v40 = vmul.f32 -1.442695, %v839_v29 }
 0xc3b   :  { %1167 = vpow2.f32 %v1084_v5 }
 0xc41   :  { %v1168_v37 = vpop.eup %1167 }
 0xc42   :  { %v905_v38 = vadd.f32 1.0, %v1168_v37 }
 0xc44   :  { %1169 = vrcp.f32 %v905_v38  ;;  %v917_v46 = vand.u32 2147483648, %v905_v38  ;;  %vm911_vm13 = vweird.f32 %v905_v38  ;;  %v915_v47 = vand.u32 2147483647, %v905_v38 }
 0xc45   :  { %1171 = vpow2.f32 %v1082_v40  ;;  %v1009_v40 = vld [vmem:[#allocation5 + $0x18] sm:$0xff] }
 0xc46   :  { %v918_v49 = vor.u32 1.1754944e-38, %v917_v46  ;;  %vm916_vm15 = vcmp.eq.f32.partialorder %v915_v47, 8.507059e+37  ;;  %1031 = vmatpush.msrb.mxu1 %v1009_v40 }
 0xc4a   :  { %v1170_v39 = vpop.eup %1169 }
 0xc4b   :  { %v907_v41 = vmul.f32 %v1170_v39, %v905_v38  ;;  %v1172_v43 = vpop.eup %1171  ;;  %vm912_vm0 = vweird.f32 %v1170_v39 }
 0xc4c   :  { %v844_v44 = vadd.f32 1.0, %v1172_v43  ;;  %vm913_vm14 = vmor %vm911_vm13, %vm912_vm0 }
 0xc4d   :  { %v908_v42 = vsub.f32 1.0, %v907_v41  ;;  %v1008_v41 = vld [vmem:[#allocation5 + $0x10] sm:$0xff] }
 0xc4e   :  { %1173 = vrcp.f32 %v844_v44  ;;  %v856_v0 = vand.u32 2147483648, %v844_v44  ;;  %vm850_vm2 = vweird.f32 %v844_v44  ;;  %v854_v60 = vand.u32 2147483647, %v844_v44  ;;  %1032 = vmatpush.msrb.mxu1 %v1008_v41 }
 0xc4f   :  { %v909_v21 = vmul.f32 %v1170_v39, %v908_v42  ;;  %v1007_v42 = vld [vmem:[#allocation5 + $0x8] sm:$0xff] }
 0xc50   :  { %v857_v62 = vor.u32 1.1754944e-38, %v856_v0  ;;  %vm855_vm4 = vcmp.eq.f32.partialorder %v854_v60, 8.507059e+37  ;;  %1033 = vmatpush.msrb.mxu1 %v1007_v42 }
 0xc51   :  { %v910_v45 = vadd.f32 %v1170_v39, %v909_v21  ;;  %v1006_v21 = vld [vmem:[#allocation5] sm:$0xff] }
 0xc52   :  { %1034 = vmatpush.msrb.mxu1 %v1006_v21 }
 0xc53   :  { %v914_v48 = vsel %vm913_vm14, %v1170_v39, %v910_v45 }
 0xc54   :  { %v919_v51 = vsel %vm916_vm15, %v918_v49, %v914_v48  ;;  %v1174_v53 = vpop.eup %1173  ;;  %v1112_v49 = vld [vmem:[%s1623_s9] ss:$0 sm:$0xff] }
 0xc55   :  { %v846_v54 = vmul.f32 %v1174_v53, %v844_v44  ;;  %vm851_vm1 = vweird.f32 %v1174_v53  ;;  %v932_v16 = vsub.f32 1.0, %v919_v51  ;;  %v938_v19 = vmul.f32 %v919_v51, %v1574_v23 }
 0xc56   :  { %vm852_vm3 = vmor %vm850_vm2, %vm851_vm1 }
 0xc57   :  { %v847_v55 = vsub.f32 1.0, %v846_v54 }
 0xc59   :  { %v848_v57 = vmul.f32 %v1174_v53, %v847_v55 }
 0xc5b   :  { %v849_v58 = vadd.f32 %v1174_v53, %v848_v57 }
 0xc5d   :  { %v853_v61 = vsel %vm852_vm3, %v1174_v53, %v849_v58 }
 0xc5e   :  { %v858_v2 = vsel %vm855_vm4, %v857_v62, %v853_v61 }
 0xc5f   :  { %v871_v25 = vsub.f32 1.0, %v858_v2  ;;  %v877_v11 = vmul.f32 %v858_v2, %v1583_v8 }
 0xc93   :  { %v923_v50 = vpop.permute.xlu2 %922 }
 0xc94   :  { %v925_v52 = vmul.f32 %v923_v50, %v919_v51 }
 0xc96   :  { %927 = vrot.lane.b32.xlu1 %v925_v52, %s1271_s2 }
 0xcac   :  { %v862_v63 = vpop.permute.xlu0 %861 }
 0xcad   :  { %v864_v4 = vmul.f32 %v862_v63, %v858_v2 }
 0xcaf   :  { %866 = vrot.lane.b32.xlu2 %v864_v4, %s1271_s2 }
 0xd08   :  { %v928_v6 = vpop.permute.xlu1 %927 }
 0xd09   :  { %v930_v56 = vadd.f32 %v928_v6, %v901_v35  ;;  %v867_v9 = vpop.permute.xlu2 %866 }
 0xd0a   :  { %v869_v10 = vadd.f32 %v867_v9, %v839_v29 }
 0xd0b   :  { %1175 = vtanh.f32 %v930_v56 }
 0xd0c   :  { %1177 = vtanh.f32 %v869_v10 }
 0xd11   :  { %v1176_v14 = vpop.eup %1175 }
 0xd12   :  { %v1178_v15 = vpop.eup %1177  ;;  %934 = vrot.lane.b32.xlu0 %v1176_v14, %s1272_s22 }
 0xd13   :  { %873 = vrot.lane.b32.xlu1 %v1178_v15, %s1272_s22 }
 0xd84   :  { %v935_v18 = vpop.permute.xlu0 %934 }
 0xd85   :  { %v937_v1 = vmul.f32 %v935_v18, %v932_v16  ;;  %v874_v59 = vpop.permute.xlu1 %873 }
 0xd86   :  { %v876_v26 = vmul.f32 %v874_v59, %v871_v25 }
 0xd87   :  { %v939_v22 = vadd.f32 %v938_v19, %v937_v1 }
 0xd88   :  { %v878_v27 = vadd.f32 %v877_v11, %v876_v26 }
 0xd89   :  { %941 = vrot.lane.b32.xlu2 %v939_v22, %s1272_s22 }
 0xde3   :  { %v942_v28 = vpop.permute.xlu2 %941 }
 0xde4   :  { %v944_v30 = vsel %vm241_vm5, %v942_v28, %v878_v27 }
 0xde5   :  { %1085 = vmatmul.msk.f32.vlgmr.msrb.gmra.mxu0 %vm309_vm6, %v944_v30 }
 0xe62   :  { %v965_v31 = vpop.f32.mrf.mxu0 }
 0xe63   :  { %v966_v3 = vadd.f32 %v1475_v33, %v965_v31 }
 0xe65   :  { %988 = vrot.lane.b32.xlu0 %v966_v3, %s1270_s20  ;;  %v1086_v23 = vmul.f32 -1.442695, %v966_v3 }
 0xe67   :  { %1179 = vpow2.f32 %v1086_v23 }
 0xe6d   :  { %v1180_v20 = vpop.eup %1179 }
 0xe6e   :  { %v971_v32 = vadd.f32 1.0, %v1180_v20 }
 0xe70   :  { %1181 = vrcp.f32 %v971_v32  ;;  %v983_v13 = vand.u32 2147483648, %v971_v32  ;;  %vm977_vm8 = vweird.f32 %v971_v32  ;;  %v981_v17 = vand.u32 2147483647, %v971_v32 }
 0xe72   :  { %v984_v36 = vor.u32 1.1754944e-38, %v983_v13  ;;  %vm982_vm9 = vcmp.eq.f32.partialorder %v981_v17, 8.507059e+37 }
 0xe76   :  { %v1182_v7 = vpop.eup %1181 }
 0xe77   :  { %v973_v24 = vmul.f32 %v1182_v7, %v971_v32  ;;  %vm978_vm7 = vweird.f32 %v1182_v7 }
 0xe78   :  { %vm979_vm6 = vmor %vm977_vm8, %vm978_vm7 }
 0xe79   :  { %v974_v34 = vsub.f32 1.0, %v973_v24 }
 0xe7b   :  { %v975_v8 = vmul.f32 %v1182_v7, %v974_v34 }
 0xe7d   :  { %v976_v12 = vadd.f32 %v1182_v7, %v975_v8 }
 0xe7f   :  { %v980_v35 = vsel %vm979_vm6, %v1182_v7, %v976_v12 }
 0xe80   :  { %v985_v29 = vsel %vm982_vm9, %v984_v36, %v980_v35 }
 0xe81   :  { %v998_v43 = vsub.f32 1.0, %v985_v29  ;;  %v1004_v45 = vmul.f32 %v985_v29, %v878_v27 }
 0xed7   :  { %v989_v33 = vpop.permute.xlu0 %988 }
 0xed8   :  { %v991_v5 = vmul.f32 %v989_v33, %v985_v29 }
 0xeda   :  { %993 = vrot.lane.b32.xlu1 %v991_v5, %s1271_s2 }
 0xf4c   :  { %v994_v37 = vpop.permute.xlu1 %993 }
 0xf4d   :  { %v996_v38 = vadd.f32 %v994_v37, %v966_v3 }
 0xf4f   :  { %1183 = vtanh.f32 %v996_v38 }
 0xf55   :  { %v1184_v39 = vpop.eup %1183 }
 0xf56   :  { %1000 = vrot.lane.b32.xlu2 %v1184_v39, %s1272_s22 }
 0xfb0   :  { %v1001_v44 = vpop.permute.xlu2 %1000 }
 0xfb1   :  { %v1003_v46 = vmul.f32 %v1001_v44, %v998_v43 }
 0xfb3   :  { %v1005_v47 = vadd.f32 %v1004_v45, %v1003_v46 }
 0xfb5   :  { %1015 = vrot.lane.b32.xlu0 %v1005_v47, %s1272_s22 }
0x1027   :  { %v1016_v48 = vpop.permute.xlu0 %1015 }
0x1028   :  { %1087 = vmatmul.msk.f32.vlgmr.msrb.gmra.mxu1 %vm241_vm5, %v1016_v48 }
0x10a5   :  { %v1036_v50 = vpop.f32.mrf.mxu1 }
0x10a6   :  { %v1037_v51 = vadd.f32 %v1112_v49, %v1036_v50 }
0x10a8   :  { %1039 = vst [vmem:[#allocation7] sm:$0xff] %v1037_v51 }
0x10a9   :  { %1050 = dma.vmem_to_hbm [thread:$0]  %s1046_s12, 128, %s1048_s15, [#allocation4]  }
0x10aa   :  { %1261 = dma.done.wait [#allocation4], 128  }
0x10ab   :  { %1262 = vsyncadd [#allocation4], 4294967168 }
0x10ac   :  { %1055 = vsyncpa [#allocation3], 1 }
0x10ad   :  { %1056 = vsyncpa [#allocation6], 1 }
0x10ae   :  { %1057 = vsyncpa [#allocation4], 1 }

</bundles_post_ra>
